<compile_context>
chip_gen: v7x
topology: tpu7x:2x2x1
jax: 0.10.0
libtpu: 0.0.40
codegen_flags: <defaults>
</compile_context>

<pallas_src>
import functools
import math

import jax
import jax.numpy as jnp
from jax.experimental import pallas as pl
from jax.experimental.pallas import tpu as pltpu


_NEG_INF = -1e30
_LANE = 128


def _round_up(v, m):
    return ((v + m - 1) // m) * m


def _tpu_generation():
    """Coarse TPU generation used only for tiling / precision heuristics."""
    try:
        kind = jax.devices()[0].device_kind.lower()
    except Exception:
        return 6
    if ("v3" in kind) or ("v4" in kind) or ("v5" in kind):
        return 5
    if "v6" in kind:
        return 6
    if "7" in kind:
        return 7
    return 6


def _gat_attn_kernel(nnz_ref, sd_ref, sst_ref, xpa_ref, adj_ref, bias_ref, out_ref,
                     m_sc, l_sc, acc_sc, *, heads, cout, negative_slope, apply_relu,
                     use_bf16_exp):
    f32 = jnp.float32
    bf16 = jnp.bfloat16
    c = cout
    ca = cout + 1                      # per-head xp slice + appended ones column

    i = pl.program_id(0)
    j = pl.program_id(1)
    n_col = pl.num_programs(1)

    @pl.when(j == 0)
    def _init():
        m_sc[...] = jnp.full(m_sc.shape, _NEG_INF, dtype=m_sc.dtype)
        l_sc[...] = jnp.zeros(l_sc.shape, dtype=l_sc.dtype)
        acc_sc[...] = jnp.zeros(acc_sc.shape, dtype=acc_sc.dtype)

    # Block-sparsity: skip all compute for (row-tile, col-tile) blocks with no edges.
    @pl.when(nnz_ref[i * n_col + j] > 0)
    def _compute():
        edge = adj_ref[...] != 0                         # [TM, TN] bool, no int8->f32 cast
        sd = sd_ref[...]                                 # [TM, H]  f32 (dest scores)
        sst = sst_ref[...]                               # [H, TN]  f32 (src scores, pre-T)
        xpa = xpa_ref[...]                               # [TN, H*(C+1)] bf16

        for h in range(heads):                           # heads is small & static -> unrolled
            lo = h * c
            e = sd[:, h:h + 1] + sst[h:h + 1, :]                       # [TM, TN]
            e = jnp.where(e > 0, e, negative_slope * e)                # LeakyReLU(0.2)
            e = jnp.where(edge, e, _NEG_INF)                           # fused mask (1 select)

            m_prev = m_sc[h]                                           # [TM, 1]
            m_new = jnp.maximum(m_prev, jnp.max(e, axis=-1, keepdims=True))
            alpha = jnp.exp(m_prev - m_new)                            # [TM, 1]
            em = e - m_new
            if use_bf16_exp:
                p = jnp.exp(em.astype(bf16))             # bf16 EUP exp (v6e/v7x, 2x thrpt)
            else:
                p = jnp.exp(em).astype(bf16)             # f32 exp on v5e
            # One MXU dot gives both the aggregation and the softmax denominator
            # (last rhs column is all ones), with f32 accumulation.
            pc = jnp.dot(p, xpa[:, h * ca:(h + 1) * ca],
                         preferred_element_type=f32)                   # [TM, C+1]
            l_sc[h] = alpha * l_sc[h] + pc[:, c:c + 1]
            acc_sc[h] = alpha * acc_sc[h] + pc[:, :c]
            m_sc[h] = m_new

    @pl.when(j == n_col - 1)
    def _finalize():
        parts = []
        for h in range(heads):
            inv = pl.reciprocal(l_sc[h], approx=True)    # EUP recip, off the VALU path
            parts.append(acc_sc[h] * inv)
        out = parts[0] if heads == 1 else jnp.concatenate(parts, axis=-1)   # [TM, H*C]
        out = out + bias_ref[...]
        if apply_relu:
            out = jnp.maximum(out, 0.0)
        out_ref[...] = out.astype(out_ref.dtype)         # one lane-dense store per row tile


def gat_conv(x_pad, adj_pad_i8, blk_nnz, W, att_src, att_dst, bias, *, heads, cout,
             apply_relu, tm, tn, gen, use_bf16_exp, out_dtype):
    np_, _ = x_pad.shape
    hc = heads * cout
    hca = heads * (cout + 1)
    f32, bf16 = jnp.float32, jnp.bfloat16

    # ---- hoisted per-layer work (computed ONCE, not once per row tile) -------------
    xp = jnp.dot(x_pad.astype(bf16), W.astype(bf16), preferred_element_type=f32)
    xp3 = xp.reshape(np_, heads, cout)
    scores_dst = jnp.einsum("nhc,hc->nh", xp3, att_dst)              # [Np, H]  f32
    scores_src_t = jnp.einsum("nhc,hc->hn", xp3, att_src)            # [H, Np]  f32 (pre-T)
    xp_aug = jnp.concatenate(
        [xp3.astype(bf16), jnp.ones((np_, heads, 1), bf16)], axis=-1
    ).reshape(np_, hca)                                              # [Np, H*(C+1)] bf16

    nbr, nbc = np_ // tm, np_ // tn

    # Generation-specific VMEM budget (cap 48 MiB on v7x's 64 MiB cores, ~100 MiB else).
    est = (2 * tm * tn                                   # adj block (int8), x2 buffers
           + 2 * tn * max(hca, _LANE) * 2                # xp_aug col tile (bf16), x2
           + 2 * (heads * tn + tm * heads) * 4           # score tiles, x2
           + 2 * tm * max(hc, _LANE) * 4                 # out block, x2
           + heads * tm * (max(cout, _LANE) + 2 * _LANE) * 4   # scratch (lane-padded)
           + 8 * tm * tn * 4)                            # live [TM,TN] f32 temporaries
    vmem_cap = (48 if gen == 7 else 100) * 1024 * 1024
    vmem_limit = int(min(vmem_cap, max(32 * 1024 * 1024, 2 * est)))

    kernel = functools.partial(
        _gat_attn_kernel, heads=heads, cout=cout, negative_slope=0.2,
        apply_relu=apply_relu, use_bf16_exp=use_bf16_exp)

    grid_spec = pltpu.PrefetchScalarGridSpec(
        num_scalar_prefetch=1,                           # block-occupancy table -> SMEM
        grid=(nbr, nbc),
        in_specs=[
            pl.BlockSpec((tm, heads), lambda i, j, nnz: (i, 0)),     # dest scores tile
            pl.BlockSpec((heads, tn), lambda i, j, nnz: (0, j)),     # src scores^T tile
            pl.BlockSpec((tn, hca), lambda i, j, nnz: (j, 0)),       # xp (+ones) col tile
            pl.BlockSpec((tm, tn), lambda i, j, nnz: (i, j)),        # adj block (int8)
            pl.BlockSpec((1, hc), lambda i, j, nnz: (0, 0)),         # bias (tiny constant)
        ],
        out_specs=pl.BlockSpec((tm, hc), lambda i, j, nnz: (i, 0)),
        scratch_shapes=[
            pltpu.VMEM((heads, tm, 1), f32),      # running max
            pltpu.VMEM((heads, tm, 1), f32),      # running sum
            pltpu.VMEM((heads, tm, cout), f32),   # running aggregation
        ])

    return pl.pallas_call(
        kernel,
        grid_spec=grid_spec,
        out_shape=jax.ShapeDtypeStruct((np_, hc), out_dtype),
        compiler_params=pltpu.CompilerParams(
            dimension_semantics=("parallel", "arbitrary"),   # row tiles across TCs (v7x)
            vmem_limit_bytes=vmem_limit),
    )(blk_nnz, scores_dst, scores_src_t, xp_aug, adj_pad_i8, bias)


def gat_forward(x, adj, params, *, head, tm=None, tn=None):
    """Mirrors GAT.forward: conv -> relu -> dropout(identity) for all but last, then conv."""
    n = x.shape[0]
    gen = _tpu_generation()
    use_bf16_exp = gen >= 6            # keep f32 exp on v5e (no bf16 EUP/VPU path)

    # ---- generation-specific tiling -------------------------------------------------
    n128 = _round_up(n, 128)
    if tm is None:
        tm = 128 if gen == 7 else 256
        if gen == 7:
            tm = min(tm, _round_up(pl.cdiv(n, 2), 128))   # >= 2 row tiles on v7x
    if tn is None:
        tn = 256 if gen == 7 else 512
    tm = max(128, min(_round_up(tm, 128), n128))
    tn = max(128, min(_round_up(tn, 128), n128))
    lcm = tm * tn // math.gcd(tm, tn)
    np_ = _round_up(n, lcm)            # pad so no block has out-of-bounds columns

    # Adjacency mask (int8) shared by all layers; padded nodes get a self-loop so their
    # softmax denominator is never zero (their outputs are sliced off at the end).
    adj_i8 = (adj > 0).astype(jnp.int8)
    adj_pad = jnp.zeros((np_, np_), jnp.int8).at[:n, :n].set(adj_i8)
    if np_ > n:
        pad_idx = jnp.arange(n, np_)
        adj_pad = adj_pad.at[pad_idx, pad_idx].set(1)

    # Per-(row-tile, col-tile) occupancy table for block-sparsity skipping (SMEM prefetch).
    blk = adj_pad.reshape(np_ // tm, tm, np_ // tn, tn)
    blk_nnz = jnp.any(blk != 0, axis=(1, 3)).astype(jnp.int32).reshape(-1)

    h = jnp.zeros((np_, x.shape[1]), x.dtype).at[:n, :].set(x)
    for li, p in enumerate(params):
        last = li == len(params) - 1
        h = gat_conv(h, adj_pad, blk_nnz, p["W"], p["att_src"], p["att_dst"], p["bias"],
                     heads=head, cout=p["cout"], apply_relu=not last, tm=tm, tn=tn,
                     gen=gen, use_bf16_exp=use_bf16_exp,
                     out_dtype=jnp.float32 if last else jnp.bfloat16)   # bf16 inter-layer
        # F.dropout(p=self.dropout) is identity at inference.
    return h[:n]


def init_gat_params(key, in_channels, hidden_channels, out_channels, num_layers, head):
    """Deterministic synthetic init mirroring GAT.__init__ layer-dim arithmetic."""
    if num_layers == 1:
        dims = [(in_channels, out_channels // head)]
    else:
        dims = [(in_channels, hidden_channels // head)]
        for _ in range(num_layers - 2):
            dims.append((hidden_channels // head, hidden_channels // head))
        dims.append((hidden_channels // head, out_channels // head))

    params = []
    for (cin, cout) in dims:
        key, k1, k2, k3, k4 = jax.random.split(key, 5)
        scale = (2.0 / (cin + cout * head)) ** 0.5
        params.append(dict(
            W=scale * jax.random.normal(k1, (cin, head * cout), jnp.float32),
            att_src=0.1 * jax.random.normal(k2, (head, cout), jnp.float32),
            att_dst=0.1 * jax.random.normal(k3, (head, cout), jnp.float32),
            bias=0.1 * jax.random.normal(k4, (1, head * cout), jnp.float32),
            cout=cout,
        ))
    return params


# ---------------- pure-JAX reference (for correctness check, no torch) ----------------
def _gat_conv_ref(x, adj, W, att_src, att_dst, bias, heads, cout, apply_relu):
    n = x.shape[0]
    xp = (x @ W).reshape(n, heads, cout)
    a_src = jnp.einsum("nhc,hc->nh", xp, att_src)
    a_dst = jnp.einsum("nhc,hc->nh", xp, att_dst)
    e = a_dst[:, None, :] + a_src[None, :, :]            # e[i, j, h]
    e = jnp.where(e > 0, e, 0.2 * e)
    e = jnp.where(adj[:, :, None] > 0, e, _NEG_INF)
    alpha = jax.nn.softmax(e, axis=1)
    out = jnp.einsum("ijh,jhc->ihc", alpha, xp).reshape(n, heads * cout) + bias
    return jnp.maximum(out, 0.0) if apply_relu else out


def gat_forward_ref(x, adj, params, *, head):
    for i, p in enumerate(params):
        last = (i == len(params) - 1)
        x = _gat_conv_ref(x, adj, p["W"], p["att_src"], p["att_dst"], p["bias"],
                          head, p["cout"], apply_relu=not last)
    return x


if __name__ == "__main__":
    key = jax.random.PRNGKey(0)
    N = 256
    key, kx, ka = jax.random.split(key, 3)
    x = jax.random.normal(kx, (N, 16), jnp.float32)
    adj = (jax.random.uniform(ka, (N, N)) < 0.05).astype(jnp.float32)
    adj = jnp.maximum(adj, jnp.eye(N, dtype=jnp.float32))  # self-loops (>=1 edge per row)

    # Tolerances are relaxed because the MXU operands (and exp on v6e/v7x) are bf16.
    # config 1: num_layers=2, head=1; explicit small tiles -> 2x2 grid (online softmax
    # across column tiles + block skipping exercised).
    p1 = init_gat_params(key, 16, 32, 16, num_layers=2, head=1)
    out1 = jax.block_until_ready(gat_forward(x, adj, p1, head=1, tm=128, tn=128))
    ref1 = gat_forward_ref(x, adj, p1, head=1)
    assert out1.shape == (N, 16)
    assert jnp.allclose(out1, ref1, atol=5e-2, rtol=5e-2), \
        float(jnp.max(jnp.abs(out1 - ref1)))

    # config 2: num_layers=1, head=4; generation-default tiling (multi-head path).
    p2 = init_gat_params(key, 16, 32, 32, num_layers=1, head=4)
    out2 = jax.block_until_ready(gat_forward(x, adj, p2, head=4))
    ref2 = gat_forward_ref(x, adj, p2, head=4)
    assert out2.shape == (N, 32)
    assert jnp.allclose(out2, ref2, atol=5e-2, rtol=5e-2), \
        float(jnp.max(jnp.abs(out2 - ref2)))

    # config 3: non-tile-multiple N exercises the padding path (no OOB adj garbage).
    N3 = 200
    x3, adj3 = x[:N3], adj[:N3, :N3]
    out3 = jax.block_until_ready(gat_forward(x3, adj3, p1, head=1, tm=128, tn=128))
    ref3 = gat_forward_ref(x3, adj3, p1, head=1)
    assert out3.shape == (N3, 16)
    assert jnp.allclose(out3, ref3, atol=5e-2, rtol=5e-2), \
        float(jnp.max(jnp.abs(out3 - ref3)))

    print("KERNEL_OK")
</pallas_src>

<mosaic_0001>
module attributes {stable_mosaic.version = 11 : i64} {
  func.func @_gat_attn_kernel(%arg0: i32, %arg1: i32, %arg2: memref<4xi32, #tpu.memory_space<smem>>, %arg3: memref<128x1xf32, #tpu.memory_space<vmem>>, %arg4: memref<1x128xf32, #tpu.memory_space<vmem>>, %arg5: memref<128x33xbf16, #tpu.memory_space<vmem>>, %arg6: memref<128x128xi8, #tpu.memory_space<vmem>>, %arg7: memref<1x32xf32, #tpu.memory_space<vmem>>, %arg8: memref<128x32xbf16, #tpu.memory_space<vmem>>, %arg9: memref<1x128x1xf32, #tpu.memory_space<vmem>>, %arg10: memref<1x128x1xf32, #tpu.memory_space<vmem>>, %arg11: memref<1x128x32xf32, #tpu.memory_space<vmem>>) attributes {dimension_semantics = [#tpu.dimension_semantics<parallel>, #tpu.dimension_semantics<arbitrary>], iteration_bounds = array<i64: 2, 2>, scalar_prefetch = 1 : i64, scratch_operands = 3 : i64, tpu.core_type = #tpu.core_type<tc>, window_params = [{transform_indices = @transform_0, window_bounds = array<i64: 128, 1>}, {transform_indices = @transform_1, window_bounds = array<i64: 1, 128>}, {transform_indices = @transform_2, window_bounds = array<i64: 128, 33>}, {transform_indices = @transform_3, window_bounds = array<i64: 128, 128>}, {pipeline_mode = #tpu.pipeline_mode<synchronous>, transform_indices = @transform_4, window_bounds = array<i64: 1, 32>}, {transform_indices = @transform_5, window_bounds = array<i64: 128, 32>}]} {
    %c0_i32 = arith.constant 0 : i32
    %0 = arith.cmpi eq, %arg1, %c0_i32 : i32
    %1 = arith.extui %0 : i1 to i32
    %c0_i32_0 = arith.constant 0 : i32
    %2 = arith.cmpi ne, %1, %c0_i32_0 : i32
    scf.if %2 {
      %cst = arith.constant -1.000000e+30 : f32
      %13 = vector.broadcast %cst : f32 to vector<1x128x1xf32>
      %c0 = arith.constant 0 : index
      %c0_4 = arith.constant 0 : index
      %c0_5 = arith.constant 0 : index
      %14 = vector.load %arg9[%c0, %c0_4, %c0_5] : memref<1x128x1xf32, #tpu.memory_space<vmem>>, vector<1x128x1xf32>
      tpu.vector_store %arg9[%c0, %c0_4, %c0_5], %13 {strides = array<i32>} : memref<1x128x1xf32, #tpu.memory_space<vmem>>, vector<1x128x1xf32>,
      %cst_6 = arith.constant 0.000000e+00 : f32
      %15 = vector.broadcast %cst_6 : f32 to vector<1x128x1xf32>
      %c0_7 = arith.constant 0 : index
      %c0_8 = arith.constant 0 : index
      %c0_9 = arith.constant 0 : index
      %16 = vector.load %arg10[%c0_7, %c0_8, %c0_9] : memref<1x128x1xf32, #tpu.memory_space<vmem>>, vector<1x128x1xf32>
      tpu.vector_store %arg10[%c0_7, %c0_8, %c0_9], %15 {strides = array<i32>} : memref<1x128x1xf32, #tpu.memory_space<vmem>>, vector<1x128x1xf32>,
      %cst_10 = arith.constant 0.000000e+00 : f32
      %17 = vector.broadcast %cst_10 : f32 to vector<1x128x32xf32>
      %c0_11 = arith.constant 0 : index
      %c0_12 = arith.constant 0 : index
      %c0_13 = arith.constant 0 : index
      %18 = vector.load %arg11[%c0_11, %c0_12, %c0_13] : memref<1x128x32xf32, #tpu.memory_space<vmem>>, vector<1x128x32xf32>
      tpu.vector_store %arg11[%c0_11, %c0_12, %c0_13], %17 {strides = array<i32>} : memref<1x128x32xf32, #tpu.memory_space<vmem>>, vector<1x128x32xf32>,
    } else {
    }
    %c2_i32 = arith.constant 2 : i32
    %3 = arith.muli %arg0, %c2_i32 : i32
    %4 = arith.addi %3, %arg1 : i32
    %5 = arith.index_cast %4 : i32 to index
    %6 = memref.load %arg2[%5] : memref<4xi32, #tpu.memory_space<smem>>
    %c0_i32_1 = arith.constant 0 : i32
    %7 = arith.cmpi sgt, %6, %c0_i32_1 : i32
    %8 = arith.extui %7 : i1 to i32
    %c0_i32_2 = arith.constant 0 : i32
    %9 = arith.cmpi ne, %8, %c0_i32_2 : i32
    scf.if %9 {
      %c0 = arith.constant 0 : index
      %c0_4 = arith.constant 0 : index
      %13 = vector.load %arg6[%c0, %c0_4] : memref<128x128xi8, #tpu.memory_space<vmem>>, vector<128x128xi8>
      %c0_i8 = arith.constant 0 : i8
      %14 = vector.broadcast %c0_i8 : i8 to vector<128x128xi8>
      %15 = arith.cmpi ne, %13, %14 : vector<128x128xi8>
      %c0_5 = arith.constant 0 : index
      %c0_6 = arith.constant 0 : index
      %16 = vector.load %arg3[%c0_5, %c0_6] : memref<128x1xf32, #tpu.memory_space<vmem>>, vector<128x1xf32>
      %c0_7 = arith.constant 0 : index
      %c0_8 = arith.constant 0 : index
      %17 = vector.load %arg4[%c0_7, %c0_8] : memref<1x128xf32, #tpu.memory_space<vmem>>, vector<1x128xf32>
      %c0_9 = arith.constant 0 : index
      %c0_10 = arith.constant 0 : index
      %18 = vector.load %arg5[%c0_9, %c0_10] : memref<128x33xbf16, #tpu.memory_space<vmem>>, vector<128x33xbf16>
      %19 = vector.broadcast %16 : vector<128x1xf32> to vector<128x128xf32>
      %20 = vector.broadcast %17 : vector<1x128xf32> to vector<128x128xf32>
      %21 = arith.addf %19, %20 : vector<128x128xf32>
      %cst = arith.constant 0.000000e+00 : f32
      %22 = vector.broadcast %cst : f32 to vector<128x128xf32>
      %23 = arith.cmpf ogt, %21, %22 : vector<128x128xf32>
      %cst_11 = arith.constant 2.000000e-01 : f32
      %24 = vector.broadcast %cst_11 : f32 to vector<128x128xf32>
      %25 = arith.mulf %24, %21 : vector<128x128xf32>
      %26 = arith.select %23, %21, %25 : vector<128x128xi1>, vector<128x128xf32>
      %cst_12 = arith.constant -1.000000e+30 : f32
      %27 = vector.broadcast %cst_12 : f32 to vector<128x128xf32>
      %28 = arith.select %15, %26, %27 : vector<128x128xi1>, vector<128x128xf32>
      %c0_13 = arith.constant 0 : index
      %c0_14 = arith.constant 0 : index
      %c0_15 = arith.constant 0 : index
      %29 = vector.load %arg9[%c0_13, %c0_14, %c0_15] : memref<1x128x1xf32, #tpu.memory_space<vmem>>, vector<1x128x1xf32>
      %30 = vector.shape_cast %29 : vector<1x128x1xf32> to vector<128x1xf32>
      %cst_16 = arith.constant dense<0xFF800000> : vector<128xf32>
      %31 = vector.multi_reduction <maximumf>, %28, %cst_16 [1] : vector<128x128xf32> to vector<128xf32>
      %32 = vector.shape_cast %31 : vector<128xf32> to vector<128x1xf32>
      %33 = arith.maximumf %30, %32 : vector<128x1xf32>
      %34 = arith.subf %30, %33 : vector<128x1xf32>
      %35 = math.exp %34 : vector<128x1xf32>
      %36 = vector.broadcast %33 : vector<128x1xf32> to vector<128x128xf32>
      %37 = arith.subf %28, %36 : vector<128x128xf32>
      %38 = arith.truncf %37 : vector<128x128xf32> to vector<128x128xbf16>
      %39 = math.exp %38 : vector<128x128xbf16>
      %cst_17 = arith.constant dense<0.000000e+00> : vector<128x33xf32>
      %40 = tpu.matmul %39, %18, %cst_17 {dimension_numbers = #tpu.dot_dimension_numbers<[1], [0], [0], [1], [0, 0, 1, 1], [], []>} : vector<128x128xbf16>, vector<128x33xbf16>, vector<128x33xf32> -> vector<128x33xf32>
      %c0_18 = arith.constant 0 : index
      %c0_19 = arith.constant 0 : index
      %c0_20 = arith.constant 0 : index
      %41 = vector.load %arg10[%c0_18, %c0_19, %c0_20] : memref<1x128x1xf32, #tpu.memory_space<vmem>>, vector<1x128x1xf32>
      %42 = vector.shape_cast %41 : vector<1x128x1xf32> to vector<128x1xf32>
      %43 = arith.mulf %35, %42 : vector<128x1xf32>
      %44 = vector.extract_strided_slice %40 {offsets = [0, 32], sizes = [128, 1], strides = [1, 1]} : vector<128x33xf32> to vector<128x1xf32>
      %45 = arith.addf %43, %44 : vector<128x1xf32>
      %c0_21 = arith.constant 0 : index
      %c0_22 = arith.constant 0 : index
      %c0_23 = arith.constant 0 : index
      %46 = vector.load %arg10[%c0_21, %c0_22, %c0_23] : memref<1x128x1xf32, #tpu.memory_space<vmem>>, vector<1x128x1xf32>
      %47 = vector.shape_cast %46 : vector<1x128x1xf32> to vector<128x1xf32>
      %48 = vector.shape_cast %45 : vector<128x1xf32> to vector<1x128x1xf32>
      tpu.vector_store %arg10[%c0_21, %c0_22, %c0_23], %48 {strides = array<i32>} : memref<1x128x1xf32, #tpu.memory_space<vmem>>, vector<1x128x1xf32>,
      %c0_24 = arith.constant 0 : index
      %c0_25 = arith.constant 0 : index
      %c0_26 = arith.constant 0 : index
      %49 = vector.load %arg11[%c0_24, %c0_25, %c0_26] : memref<1x128x32xf32, #tpu.memory_space<vmem>>, vector<1x128x32xf32>
      %50 = vector.shape_cast %49 : vector<1x128x32xf32> to vector<128x32xf32>
      %51 = vector.broadcast %35 : vector<128x1xf32> to vector<128x32xf32>
      %52 = arith.mulf %51, %50 : vector<128x32xf32>
      %53 = vector.extract_strided_slice %40 {offsets = [0, 0], sizes = [128, 32], strides = [1, 1]} : vector<128x33xf32> to vector<128x32xf32>
      %54 = arith.addf %52, %53 : vector<128x32xf32>
      %c0_27 = arith.constant 0 : index
      %c0_28 = arith.constant 0 : index
      %c0_29 = arith.constant 0 : index
      %55 = vector.load %arg11[%c0_27, %c0_28, %c0_29] : memref<1x128x32xf32, #tpu.memory_space<vmem>>, vector<1x128x32xf32>
      %56 = vector.shape_cast %55 : vector<1x128x32xf32> to vector<128x32xf32>
      %57 = vector.shape_cast %54 : vector<128x32xf32> to vector<1x128x32xf32>
      tpu.vector_store %arg11[%c0_27, %c0_28, %c0_29], %57 {strides = array<i32>} : memref<1x128x32xf32, #tpu.memory_space<vmem>>, vector<1x128x32xf32>,
      %c0_30 = arith.constant 0 : index
      %c0_31 = arith.constant 0 : index
      %c0_32 = arith.constant 0 : index
      %58 = vector.load %arg9[%c0_30, %c0_31, %c0_32] : memref<1x128x1xf32, #tpu.memory_space<vmem>>, vector<1x128x1xf32>
      %59 = vector.shape_cast %58 : vector<1x128x1xf32> to vector<128x1xf32>
      %60 = vector.shape_cast %33 : vector<128x1xf32> to vector<1x128x1xf32>
      tpu.vector_store %arg9[%c0_30, %c0_31, %c0_32], %60 {strides = array<i32>} : memref<1x128x1xf32, #tpu.memory_space<vmem>>, vector<1x128x1xf32>,
    } else {
    }
    %c1_i32 = arith.constant 1 : i32
    %10 = arith.cmpi eq, %arg1, %c1_i32 : i32
    %11 = arith.extui %10 : i1 to i32
    %c0_i32_3 = arith.constant 0 : i32
    %12 = arith.cmpi ne, %11, %c0_i32_3 : i32
    scf.if %12 {
      %c0 = arith.constant 0 : index
      %c0_4 = arith.constant 0 : index
      %c0_5 = arith.constant 0 : index
      %13 = vector.load %arg10[%c0, %c0_4, %c0_5] : memref<1x128x1xf32, #tpu.memory_space<vmem>>, vector<1x128x1xf32>
      %14 = vector.shape_cast %13 : vector<1x128x1xf32> to vector<128x1xf32>
      %15 = tpu.reciprocal %14 {approx = true} : vector<128x1xf32> -> vector<128x1xf32>
      %c0_6 = arith.constant 0 : index
      %c0_7 = arith.constant 0 : index
      %c0_8 = arith.constant 0 : index
      %16 = vector.load %arg11[%c0_6, %c0_7, %c0_8] : memref<1x128x32xf32, #tpu.memory_space<vmem>>, vector<1x128x32xf32>
      %17 = vector.shape_cast %16 : vector<1x128x32xf32> to vector<128x32xf32>
      %18 = vector.broadcast %15 : vector<128x1xf32> to vector<128x32xf32>
      %19 = arith.mulf %17, %18 : vector<128x32xf32>
      %c0_9 = arith.constant 0 : index
      %c0_10 = arith.constant 0 : index
      %20 = vector.load %arg7[%c0_9, %c0_10] : memref<1x32xf32, #tpu.memory_space<vmem>>, vector<1x32xf32>
      %21 = vector.broadcast %20 : vector<1x32xf32> to vector<128x32xf32>
      %22 = arith.addf %19, %21 : vector<128x32xf32>
      %cst = arith.constant 0.000000e+00 : f32
      %23 = vector.broadcast %cst : f32 to vector<128x32xf32>
      %24 = arith.maximumf %22, %23 : vector<128x32xf32>
      %25 = arith.truncf %24 : vector<128x32xf32> to vector<128x32xbf16>
      %c0_11 = arith.constant 0 : index
      %c0_12 = arith.constant 0 : index
      %26 = vector.load %arg8[%c0_11, %c0_12] : memref<128x32xbf16, #tpu.memory_space<vmem>>, vector<128x32xbf16>
      tpu.vector_store %arg8[%c0_11, %c0_12], %25 {strides = array<i32>} : memref<128x32xbf16, #tpu.memory_space<vmem>>, vector<128x32xbf16>,
    } else {
    }
    return
  }
  func.func @transform_0(%arg0: i32, %arg1: i32, %arg2: memref<4xi32, #tpu.memory_space<smem>>) -> (i32, i32) {
    %c0_i32 = arith.constant 0 : i32
    %c0_i32_0 = arith.constant 0 : i32
    return %arg0, %c0_i32 : i32, i32
  }
  func.func @transform_1(%arg0: i32, %arg1: i32, %arg2: memref<4xi32, #tpu.memory_space<smem>>) -> (i32, i32) {
    %c0_i32 = arith.constant 0 : i32
    %c0_i32_0 = arith.constant 0 : i32
    return %c0_i32, %arg1 : i32, i32
  }
  func.func @transform_2(%arg0: i32, %arg1: i32, %arg2: memref<4xi32, #tpu.memory_space<smem>>) -> (i32, i32) {
    %c0_i32 = arith.constant 0 : i32
    %c0_i32_0 = arith.constant 0 : i32
    return %arg1, %c0_i32 : i32, i32
  }
  func.func @transform_3(%arg0: i32, %arg1: i32, %arg2: memref<4xi32, #tpu.memory_space<smem>>) -> (i32, i32) {
    %c0_i32 = arith.constant 0 : i32
    return %arg0, %arg1 : i32, i32
  }
  func.func @transform_4(%arg0: i32, %arg1: i32, %arg2: memref<4xi32, #tpu.memory_space<smem>>) -> (i32, i32) {
    %c0_i32 = arith.constant 0 : i32
    %c0_i32_0 = arith.constant 0 : i32
    %c0_i32_1 = arith.constant 0 : i32
    return %c0_i32, %c0_i32_0 : i32, i32
  }
  func.func @transform_5(%arg0: i32, %arg1: i32, %arg2: memref<4xi32, #tpu.memory_space<smem>>) -> (i32, i32) {
    %c0_i32 = arith.constant 0 : i32
    %c0_i32_0 = arith.constant 0 : i32
    return %arg0, %c0_i32 : i32, i32
  }
}

</mosaic_0001>

<bundles_post_ra>
// kernel: tpu_custom_call.1
= control target key start
LH: loop header
LB: loop body
LE: loop exit
PB: predicated region body
PF: predicated region fallthrough
CT: control target
= control target key end

     0   :  { %s2916_s0 = inlined_call_operand.vmem [shape: s32[4], index: 0, kind: input, shape index: {}]   ;;  %s2917_s1 = inlined_call_operand.vmem [shape: f32[256,1], index: 1, kind: input, shape index: {}]   ;;  %s2918_s2 = inlined_call_operand.vmem [shape: f32[1,256], index: 2, kind: input, shape index: {}]   ;;  %s2919_s3 = inlined_call_operand.vmem [shape: bf16[256,33], index: 3, kind: input, shape index: {}]   ;;  %s2920_s4 = inlined_call_operand.vmem [shape: s8[256,256], index: 4, kind: input, shape index: {}]   ;;  %s2921_s5 = inlined_call_operand.vmem [shape: f32[1,32], index: 5, kind: input, shape index: {}]   ;;  %s2922_s6 = inlined_call_operand.vmem [shape: bf16[256,32], index: 6, kind: output, shape index: {}]  }
   0x1   :  { %2925 = sst [smem:[#allocation11_spill]] %s2920_s4  ;;  %s11_s23 = sshll.u32 %s2916_s0, 4  ;;  %s12_s23 = int_to_ptr.vmem [resolvable:$true] %s11_s23 }
   0x2   :  { %s2077_s24 = scalar_lea.vmem %s12_s23, 16  ;;  %p2082_p1 = scmp.lt.s32.totalorder %s12_s23, %s12_s23 }
   0x3   :  { %p2078_p0 = scmp.ne.s32.totalorder %s12_s23, %s2077_s24  ;;  %p2083_p2 = scmp.lt.s32.totalorder %s2077_s24, %s2077_s24 }
   0x5   :  { %p2084_p3 = por %p2083_p2, %p2082_p1 }
   0x7   :  { %p2085_p4 = pnand %p2084_p3, %p2078_p0 }
   0x9   :  { %2088 = shalt.err (!%p2085_p4)  }
   0xa   :  { %s2147_s25 = smov [#allocation6]  }
   0xb   :  { %14 = dma.vmem_to_smem %s12_s23, 16, %s2147_s25, [#allocation5] }
   0xc   :  { %2117 = dma.done.wait [#allocation5], 16 }
   0xd   :  { %2118 = vsyncadd [#allocation5], 4294967280 }
   0xe   :  { %16 = sfence }
   0xf   :  { %s2191_s26 = smov 0   ;;  %s2193_s27 = smov 0  }
  0x10   :  { %s2195_s28 = smov 0   ;;  %s2197_s0 = smov 0  }
  0x11   :  { %s2199_s29 = smov 0   ;;  %s2201_s30 = smov 0  }
  0x12   :  { %s2203_s7 = smov 0  }
  0x13 LB: > { %s31_s8 = sadd.s32 1, %s2137_s29  ;;  %s34_s9 = sadd.s32 1, %s2141_s30  ;;  %s2145_s7 = sphi %s2203_s7, %s22_s7   ;;  %s2141_s30 = sphi %s2201_s30, %s2976_s30   ;;  %s2137_s29 = sphi %s2199_s29, %s2975_s29   ;;  %s2133_s0 = sphi %s2197_s0, %s2974_s0   ;;  %s2129_s28 = sphi %s2195_s28, %s2973_s28   ;;  %s2125_s27 = sphi %s2193_s27, %s2972_s27   ;;  %s2121_s26 = sphi %s2191_s26, %s2971_s26  }
  0x14   : > { %p32_p5 = scmp.ge.s32.totalorder %s31_s8, 2  ;;  %p128_p6 = scmp.ne.s32.totalorder %s2125_s27, %s2121_s26 }
  0x15   : > { %p129_p7 = scmp.eq.s32.totalorder %s2145_s7, 0  ;;  %s121_s13 = sadd.s32 1, %s2125_s27 }
  0x16   : > { %s2978_s8 = smov (%p32_p5, %s31_s8), 0  ;;  %s2980_s9 = smov (!%p32_p5, %s34_s9), %s2141_s30 }
  0x17   : > { %2926 = sst [smem:[#allocation9_spill]] %s2978_s8  ;;  %p130_p8 = por %p129_p7, %p128_p6 }
  0x18   : > { %p36_p9 = scmp.ge.s32.totalorder %s2980_s9, 2  ;;  %s117_s10 = ssub.s32 %s2137_s29, %s2978_s8 }
  0x19   : > { %p1797_p11 = scmp.ge.s32.totalorder %s2145_s7, 4 }
  0x1a   : > { %s2982_s9 = smov (%p36_p9, %s2980_s9), 0 }
  0x1b   : > { %2927 = sst [smem:[#allocation10_spill]] %s2982_s9  ;;  %s116_s11 = ssub.s32 %s2141_s30, %s2982_s9 }
  0x1c   : > { %s118_s12 = sor.u32 %s117_s10, %s116_s11  ;;  %204 = sbr.rel (%p1797_p11) target bundleno = 47 (0x2f), region = 20 }
  0x1d   : > { %p119_p10 = scmp.eq.s32.totalorder %s118_s12, 0 }
  0x1f   : > { %s2242_s14 = scalar_select %p119_p10, %s2125_s27, %s121_s13  }
  0x23   : > { %231 = sbr.rel (!%p130_p8) target bundleno = 47 (0x2f), region = 36  ;;  %s233_s15 = sand.u32 (%p130_p8), 1, %s2125_s27  }
  0x24   : > { %s1842_s16 = sshll.u32 (%p130_p8), %s2141_s30, 3  ;;  %s1798_s17 = sshll.u32 (%p130_p8), %s233_s15, 5 }
  0x25   : > { %s238_s18 = sadd.s32 (%p130_p8), %s2137_s29, %s1842_s16  ;;  %s2928_s4 = sld [smem:[#allocation11_spill]] (%p130_p8) }
  0x26   : > { %s1801_s19 = sshll.u32 (%p130_p8), %s238_s18, 3  ;;  %s235_s23 = scalar_lea.vmem (%p130_p8), [#allocation7], %s1798_s17 }
  0x2b   : > { %s240_s22 = scalar_lea.vmem %s2928_s4, %s1801_s19 }
  0x2c   : > { %v274_v0 = vld [vmem:[%s240_s22] sm:$0xff]  ;;  %v276_v1 = vld [vmem:[%s240_s22 + $0x10] sm:$0xff] }
  0x2d   : > { %v278_v2 = vld [vmem:[%s240_s22 + $0x20] sm:$0xff]  ;;  %275 = vst [vmem:[%s235_s23] sm:$0xff] %v274_v0  ;;  %277 = vst [vmem:[%s235_s23 + $0x8] sm:$0xff] %v276_v1  ;;  %v280_v3 = vld [vmem:[%s240_s22 + $0x30] sm:$0xff] }
  0x2e   : > { %279 = vst [vmem:[%s235_s23 + $0x10] sm:$0xff] %v278_v2  ;;  %281 = vst [vmem:[%s235_s23 + $0x18] sm:$0xff] %v280_v3 }
  0x2f PF: > { %p1802_p12 = scmp.ge.s32.totalorder %s2145_s7, 1  ;;  %p286_p13 = scmp.lt.s32.totalorder %s2145_s7, 5 }
  0x31   : > { %p287_p0 = pnand %p1802_p12, %p286_p13 }
  0x32   : > { %s293_s24 = sand.u32 (!%p287_p0), 1, %s2121_s26   ;;  %s1804_s25 = sshll.u32 (!%p287_p0), %s2133_s0, 4 }
  0x33   : > { %290 = sbr.rel (%p287_p0) target bundleno = 1071 (0x42f), region = 74  ;;  %s1803_s10 = sshll.u32 (!%p287_p0), %s293_s24, 5 }
  0x34   : > { %p334_p1 = scmp.lt.s32.totalorder (!%p287_p0), %s1804_s25, 31  ;;  %p339_p2 = scmp.lt.s32.totalorder (!%p287_p0), %s2129_s28, 1 }
  0x35   : > { %s1806_s13 = sshll.u32 (!%p287_p0), %s2129_s28, 4  ;;  %p1810_p4 = scmp.ne.s32.totalorder (!%p287_p0), %s2129_s28, 0 }
  0x36   : > { %p343_p3 = scmp.lt.s32.totalorder (!%p287_p0), %s1806_s13, 31 }
  0x3a   : > { %s2984_s25 = smov (!%p334_p1, %s1804_s25), 31  ;;  %s2986_s13 = smov (!%p343_p3, %s1806_s13), 31 }
  0x3b   : > { %s2257_s11 = scalar_select %p339_p2, %s2129_s28, 1 }
  0x3c   : > { %s1805_s12 = sshll.u32 %s2984_s25, 3  ;;  %s1809_s26 = sshll.u32 %s2984_s25, 2  ;;  %vm362_vm0 = vcmask (!%p1810_p4), 7168   ;;  %vm395_vm1 = vcmask (!%p1810_p4), 261120   ;;  %v2148_v4 = vmov (!%p1810_p4), -1e+30  }
  0x3d   : > { %s2263_s17 = scalar_lea.vmem %s2917_s1, %s1805_s12  ;;  %s341_s20 = scalar_lea.vmem %s2918_s2, %s2257_s11  ;;  %363 = vst.msk [vmem:[#allocation2] sm:$0xff] (!%p1810_p4), %vm362_vm0, %v2148_v4  ;;  %364 = vst.msk [vmem:[#allocation2 + $0x8] sm:$0xff] (!%p1810_p4), %vm362_vm0, %v2148_v4  ;;  %v2149_v5 = vmov (!%p1810_p4), 0.0  }
  0x3e   : > { %s2272_s23 = scalar_lea.vmem %s2922_s6, %s1809_s26  ;;  %s1807_s24 = sshll.u32 %s2986_s13, 2  ;;  %365 = vst.msk [vmem:[#allocation2 + $0x10] sm:$0xff] (!%p1810_p4), %vm362_vm0, %v2148_v4  ;;  %366 = vst.msk [vmem:[#allocation2 + $0x18] sm:$0xff] (!%p1810_p4), %vm362_vm0, %v2148_v4 }
  0x3f   : > { %s2277_s8 = scalar_lea.vmem %s2919_s3, %s1807_s24  ;;  %s2279_s12 = scalar_lea.vmem [#allocation7], %s1803_s10  ;;  %367 = vst.msk [vmem:[#allocation2 + $0x20] sm:$0xff] (!%p1810_p4), %vm362_vm0, %v2148_v4  ;;  %368 = vst.msk [vmem:[#allocation2 + $0x28] sm:$0xff] (!%p1810_p4), %vm362_vm0, %v2148_v4 }
  0x40   : > { %361 = sbr.rel (%p1810_p4) target bundleno = 85 (0x55), region = 82  ;;  %369 = vst.msk [vmem:[#allocation2 + $0x30] sm:$0xff] (!%p1810_p4), %vm362_vm0, %v2148_v4  ;;  %370 = vst.msk [vmem:[#allocation2 + $0x38] sm:$0xff] (!%p1810_p4), %vm362_vm0, %v2148_v4 }
  0x41   : > { %371 = vst.msk [vmem:[#allocation2 + $0x40] sm:$0xff] (!%p1810_p4), %vm362_vm0, %v2148_v4  ;;  %372 = vst.msk [vmem:[#allocation2 + $0x48] sm:$0xff] (!%p1810_p4), %vm362_vm0, %v2148_v4 }
  0x42   : > { %373 = vst.msk [vmem:[#allocation2 + $0x50] sm:$0xff] (!%p1810_p4), %vm362_vm0, %v2148_v4  ;;  %374 = vst.msk [vmem:[#allocation2 + $0x58] sm:$0xff] (!%p1810_p4), %vm362_vm0, %v2148_v4 }
  0x43   : > { %375 = vst.msk [vmem:[#allocation2 + $0x60] sm:$0xff] (!%p1810_p4), %vm362_vm0, %v2148_v4  ;;  %376 = vst.msk [vmem:[#allocation2 + $0x68] sm:$0xff] (!%p1810_p4), %vm362_vm0, %v2148_v4 }
  0x44   : > { %377 = vst.msk [vmem:[#allocation2 + $0x70] sm:$0xff] (!%p1810_p4), %vm362_vm0, %v2148_v4  ;;  %378 = vst.msk [vmem:[#allocation2 + $0x78] sm:$0xff] (!%p1810_p4), %vm362_vm0, %v2148_v4 }
  0x45   : > { %379 = vst.msk [vmem:[#allocation3] sm:$0xff] (!%p1810_p4), %vm362_vm0, %v2149_v5  ;;  %380 = vst.msk [vmem:[#allocation3 + $0x8] sm:$0xff] (!%p1810_p4), %vm362_vm0, %v2149_v5 }
  0x46   : > { %381 = vst.msk [vmem:[#allocation3 + $0x10] sm:$0xff] (!%p1810_p4), %vm362_vm0, %v2149_v5  ;;  %382 = vst.msk [vmem:[#allocation3 + $0x18] sm:$0xff] (!%p1810_p4), %vm362_vm0, %v2149_v5 }
  0x47   : > { %383 = vst.msk [vmem:[#allocation3 + $0x20] sm:$0xff] %vm362_vm0, %v2149_v5  ;;  %384 = vst.msk [vmem:[#allocation3 + $0x28] sm:$0xff] %vm362_vm0, %v2149_v5 }
  0x48   : > { %385 = vst.msk [vmem:[#allocation3 + $0x30] sm:$0xff] %vm362_vm0, %v2149_v5  ;;  %386 = vst.msk [vmem:[#allocation3 + $0x38] sm:$0xff] %vm362_vm0, %v2149_v5 }
  0x49   : > { %387 = vst.msk [vmem:[#allocation3 + $0x40] sm:$0xff] %vm362_vm0, %v2149_v5  ;;  %388 = vst.msk [vmem:[#allocation3 + $0x48] sm:$0xff] %vm362_vm0, %v2149_v5 }
  0x4a   : > { %389 = vst.msk [vmem:[#allocation3 + $0x50] sm:$0xff] %vm362_vm0, %v2149_v5  ;;  %390 = vst.msk [vmem:[#allocation3 + $0x58] sm:$0xff] %vm362_vm0, %v2149_v5 }
  0x4b   : > { %391 = vst.msk [vmem:[#allocation3 + $0x60] sm:$0xff] %vm362_vm0, %v2149_v5  ;;  %392 = vst.msk [vmem:[#allocation3 + $0x68] sm:$0xff] %vm362_vm0, %v2149_v5 }
  0x4c   : > { %393 = vst.msk [vmem:[#allocation3 + $0x70] sm:$0xff] %vm362_vm0, %v2149_v5  ;;  %394 = vst.msk [vmem:[#allocation3 + $0x78] sm:$0xff] %vm362_vm0, %v2149_v5 }
  0x4d   : > { %396 = vst.msk [vmem:[#allocation4] sm:$0xff] %vm395_vm1, %v2149_v5  ;;  %397 = vst.msk [vmem:[#allocation4 + $0x8] sm:$0xff] %vm395_vm1, %v2149_v5 }
  0x4e   : > { %398 = vst.msk [vmem:[#allocation4 + $0x10] sm:$0xff] %vm395_vm1, %v2149_v5  ;;  %399 = vst.msk [vmem:[#allocation4 + $0x18] sm:$0xff] %vm395_vm1, %v2149_v5 }
  0x4f   : > { %400 = vst.msk [vmem:[#allocation4 + $0x20] sm:$0xff] %vm395_vm1, %v2149_v5  ;;  %401 = vst.msk [vmem:[#allocation4 + $0x28] sm:$0xff] %vm395_vm1, %v2149_v5 }
  0x50   : > { %402 = vst.msk [vmem:[#allocation4 + $0x30] sm:$0xff] %vm395_vm1, %v2149_v5  ;;  %403 = vst.msk [vmem:[#allocation4 + $0x38] sm:$0xff] %vm395_vm1, %v2149_v5 }
  0x51   : > { %404 = vst.msk [vmem:[#allocation4 + $0x40] sm:$0xff] %vm395_vm1, %v2149_v5  ;;  %405 = vst.msk [vmem:[#allocation4 + $0x48] sm:$0xff] %vm395_vm1, %v2149_v5 }
  0x52   : > { %406 = vst.msk [vmem:[#allocation4 + $0x50] sm:$0xff] %vm395_vm1, %v2149_v5  ;;  %407 = vst.msk [vmem:[#allocation4 + $0x58] sm:$0xff] %vm395_vm1, %v2149_v5 }
  0x53   : > { %408 = vst.msk [vmem:[#allocation4 + $0x60] sm:$0xff] %vm395_vm1, %v2149_v5  ;;  %409 = vst.msk [vmem:[#allocation4 + $0x68] sm:$0xff] %vm395_vm1, %v2149_v5 }
  0x54   : > { %410 = vst.msk [vmem:[#allocation4 + $0x70] sm:$0xff] %vm395_vm1, %v2149_v5  ;;  %411 = vst.msk [vmem:[#allocation4 + $0x78] sm:$0xff] %vm395_vm1, %v2149_v5 }
  0x55 PF: > { %s1811_s4 = sshll.u32 %s2133_s0, 1 }
  0x56   : > { %s413_s9 = sadd.s32 %s2129_s28, %s1811_s4 }
  0x57   : > { %s414_s25 = sld [smem:[#allocation6 + %s413_s9]] }
  0x5d   : > { %p1812_p5 = scmp.le.s32.totalorder %s414_s25, 0 }
  0x5e   : > { %v435_v6 = vld [vmem:[%s2263_s17 + $0x40] sm:$0xff] (!%p1812_p5)  ;;  %v2150_v8 = vmov (!%p1812_p5), 0   ;;  %v436_v9 = vld [vmem:[%s2263_s17 + $0x48] sm:$0xff] (!%p1812_p5)  ;;  %v430_v11 = vld [vmem:[%s2263_s17 + $0x18] sm:$0xff] (!%p1812_p5) }
  0x5f   : > { %418 = sbr.rel (%p1812_p5) target bundleno = 892 (0x37c), region = 86  ;;  %v427_v7 = vld [vmem:[%s2263_s17] sm:$0xff] (!%p1812_p5)  ;;  %1986 = vset.pattern.permute.xlu1 (!%p1812_p5), %v2150_v8  ;;  %1985 = vset.pattern.permute.xlu0 (!%p1812_p5), %v2150_v8  ;;  %v428_v10 = vld [vmem:[%s2263_s17 + $0x8] sm:$0xff] (!%p1812_p5)  ;;  %v429_v12 = vld [vmem:[%s2263_s17 + $0x10] sm:$0xff] (!%p1812_p5) }
  0x60   : > { %502 = vperm.xlu1 (!%p1812_p5), %1986, %v435_v6   ;;  %462 = vperm.xlu0 (!%p1812_p5), %1985, %v427_v7   ;;  %v438_v13 = vld [vmem:[%s2263_s17 + $0x58] sm:$0xff] (!%p1812_p5)  ;;  %v437_v14 = vld [vmem:[%s2263_s17 + $0x50] sm:$0xff] (!%p1812_p5)  ;;  %v432_v15 = vld [vmem:[%s2263_s17 + $0x28] sm:$0xff] (!%p1812_p5) }
  0x61   : > { %v431_v16 = vld [vmem:[%s2263_s17 + $0x20] sm:$0xff] (!%p1812_p5)  ;;  %v440_v17 = vld [vmem:[%s2263_s17 + $0x68] sm:$0xff] (!%p1812_p5)  ;;  %v434_v19 = vld [vmem:[%s2263_s17 + $0x38] sm:$0xff] (!%p1812_p5) }
  0x62   : > { %v439_v18 = vld [vmem:[%s2263_s17 + $0x60] sm:$0xff] (!%p1812_p5)  ;;  %v433_v20 = vld [vmem:[%s2263_s17 + $0x30] sm:$0xff] (!%p1812_p5)  ;;  %v442_v21 = vld [vmem:[%s2263_s17 + $0x78] sm:$0xff] (!%p1812_p5) }
  0x63   : > { %v441_v22 = vld [vmem:[%s2263_s17 + $0x70] sm:$0xff] (!%p1812_p5)  ;;  %v419_v23 = vld [vmem:[%s2279_s12] sm:$0xff] (!%p1812_p5)  ;;  %v420_v31 = vld [vmem:[%s2279_s12 + $0x8] sm:$0xff] (!%p1812_p5) }
  0x64   : > { %507 = vperm.xlu1 (!%p1812_p5), %1986, %v436_v9   ;;  %467 = vperm.xlu0 (!%p1812_p5), %1985, %v428_v10   ;;  %v421_v24 = vld [vmem:[%s2279_s12 + $0x10] sm:$0xff] (!%p1812_p5)  ;;  %vm423_vm2 = vnez (!%p1812_p5), %v419_v23  ;;  %vm424_vm4 = vnez (!%p1812_p5), %v420_v31  ;;  %v422_v49 = vld [vmem:[%s2279_s12 + $0x18] sm:$0xff] (!%p1812_p5)  ;;  %v2376_v7 = vld [vmem:[%s341_s20] ss:$0 sm:$0xff] (!%p1812_p5) }
  0x65   : > { %vm425_vm3 = vnez (!%p1812_p5), %v421_v24  ;;  %v610_v25 = vsel (!%p1812_p5), %vm423_vm2, 16843009, %v2150_v8  ;;  %v2356_v41 = vsel (!%p1812_p5), %vm424_vm4, 16843009, %v2150_v8  ;;  %vm426_vm9 = vnez (!%p1812_p5), %v422_v49 }
  0x66   : > { %v612_v26 = vsel %vm425_vm3, 16843009, %v2150_v8  ;;  %v614_v27 = vunpack.c.0.s8 %v610_v25  ;;  %v615_v28 = vunpack.c.1.s8 %v610_v25  ;;  %v616_v30 = vunpack.c.2.s8 %v610_v25 }
  0x67   : > { %v622_v29 = vunpack.c.0.s8 %v612_v26  ;;  %v623_v34 = vunpack.c.1.s8 %v612_v26  ;;  %v624_v35 = vunpack.c.2.s8 %v612_v26  ;;  %v617_v36 = vunpack.c.3.s8 %v610_v25 }
  0x68   : > { %477 = vperm.xlu1 %1986, %v430_v11   ;;  %472 = vperm.xlu0 %1985, %v429_v12   ;;  %v630_v32 = vpack.c.b16 %v614_v27, %v614_v27  ;;  %v632_v33 = vpack.c.b16 %v615_v28, %v615_v28  ;;  %v634_v38 = vpack.c.b16 %v616_v30, %v616_v30  ;;  %v618_v47 = vunpack.c.0.s8 %v2356_v41  ;;  %v1987_v28 = vld [vmem:[%s2277_s8] sm:$0xff]  }
  0x69   : > { %v646_v37 = vpack.c.b16 %v622_v29, %v622_v29  ;;  %v648_v42 = vpack.c.b16 %v623_v34, %v623_v34  ;;  %v650_v43 = vpack.c.b16 %v624_v35, %v624_v35  ;;  %v636_v44 = vpack.c.b16 %v617_v36, %v617_v36  ;;  %1875 = vmatprep.subr.bf16.mxu0 %v1987_v28 }
  0x6a   : > { %v631_v39 = vpack.c.b8 %v630_v32, %v630_v32  ;;  %v633_v40 = vpack.c.b8 %v632_v33, %v632_v33  ;;  %v635_v46 = vpack.c.b8 %v634_v38, %v634_v38  ;;  %v625_v48 = vunpack.c.3.s8 %v612_v26  ;;  %1907 = vmatprep.subr.bf16.mxu1 %v1987_v28  ;;  %1876 = vmatpush3.bf16.msra.mxu0 %v1987_v28 }
  0x6b   : > { %v647_v45 = vpack.c.b8 %v646_v37, %v646_v37  ;;  %v649_v50 = vpack.c.b8 %v648_v42, %v648_v42  ;;  %v651_v51 = vpack.c.b8 %v650_v43, %v650_v43  ;;  %v637_v52 = vpack.c.b8 %v636_v44, %v636_v44  ;;  %1915 = vmatpush3.bf16.msra.mxu1 %v1987_v28 }
  0x6c   : > { %517 = vperm.xlu1 %1986, %v438_v13   ;;  %512 = vperm.xlu0 %1985, %v437_v14   ;;  %vm662_vm5 = vnez %v631_v39  ;;  %vm663_vm6 = vnez %v633_v40  ;;  %vm664_vm8 = vnez %v635_v46  ;;  %v619_v53 = vunpack.c.1.s8 %v2356_v41 }
  0x6d   : > { %vm670_vm7 = vnez %v647_v45  ;;  %v678_v54 = vsel %vm662_vm5, 16843009, %v2150_v8  ;;  %v679_v55 = vsel %vm663_vm6, 16843009, %v2150_v8  ;;  %v638_v56 = vpack.c.b16 %v618_v47, %v618_v47 }
  0x6e   : > { %v652_v57 = vpack.c.b16 %v625_v48, %v625_v48  ;;  %v620_v58 = vunpack.c.2.s8 %v2356_v41  ;;  %v686_v59 = vsel %vm670_vm7, 16843009, %v2150_v8  ;;  %vm671_vm10 = vnez %v649_v50 }
  0x6f   : > { %v2366_v60 = vsel %vm426_vm9, 16843009, %v2150_v8  ;;  %v694_v61 = vunpack.c.0.s8 %v678_v54  ;;  %v695_v62 = vunpack.c.0.s8 %v679_v55  ;;  %v680_v63 = vsel %vm664_vm8, 16843009, %v2150_v8 }
  0x70   : > { %487 = vperm.xlu1 %1986, %v432_v15   ;;  %482 = vperm.xlu0 %1985, %v431_v16   ;;  %v640_v0 = vpack.c.b16 %v619_v53, %v619_v53  ;;  %vm672_vm11 = vnez %v651_v51  ;;  %vm665_vm12 = vnez %v637_v52  ;;  %v639_v1 = vpack.c.b8 %v638_v56, %v638_v56 }
  0x71   : > { %v653_v2 = vpack.c.b8 %v652_v57, %v652_v57  ;;  %v702_v3 = vunpack.c.0.s8 %v686_v59  ;;  %v687_v4 = vsel %vm671_vm10, 16843009, %v2150_v8  ;;  %v626_v5 = vunpack.c.0.s8 %v2366_v60 }
  0x72   : > { %v642_v6 = vpack.c.b16 %v620_v58, %v620_v58  ;;  %v696_v9 = vunpack.c.0.s8 %v680_v63  ;;  %vm2378_vm13 = vcmp.ne.s32.totalorder %v694_v61, 0  ;;  %v688_v11 = vsel %vm672_vm11, 16843009, %v2150_v8 }
  0x73   : > { %v681_v12 = vsel %vm665_vm12, 16843009, %v2150_v8  ;;  %v641_v13 = vpack.c.b8 %v640_v0, %v640_v0  ;;  %vm2384_vm14 = vcmp.ne.s32.totalorder %v695_v62, 0  ;;  %v703_v15 = vunpack.c.0.s8 %v687_v4 }
  0x74   : > { %527 = vperm.xlu1 %1986, %v440_v17   ;;  %522 = vperm.xlu0 %1985, %v439_v18   ;;  %vm666_vm15 = vnez %v639_v1  ;;  %vm673_vm0 = vnez %v653_v2  ;;  %vm2388_vm1 = vcmp.ne.s32.totalorder %v702_v3, 0  ;;  %v704_v24 = vunpack.c.0.s8 %v688_v11 }
  0x75   : > { %v697_v25 = vunpack.c.0.s8 %v681_v12  ;;  %v682_v26 = vsel %vm666_vm15, 16843009, %v2150_v8  ;;  %v689_v27 = vsel %vm673_vm0, 16843009, %v2150_v8  ;;  %vm2397_vm2 = vnez %v641_v13 }
  0x76   : > { %v628_v29 = vunpack.c.2.s8 %v2366_v60  ;;  %vm2402_vm4 = vcmp.ne.s32.totalorder %v696_v9, 0  ;;  %vm2406_vm5 = vcmp.ne.s32.totalorder %v703_v15, 0  ;;  %v621_v34 = vunpack.c.3.s8 %v2356_v41 }
  0x77   : > { %v2420_v44 = vsel %vm2397_vm2, 16843009, %v2150_v8  ;;  %v698_v45 = vunpack.c.0.s8 %v682_v26  ;;  %v705_v46 = vunpack.c.0.s8 %v689_v27  ;;  %vm2428_vm9 = vcmp.ne.s32.totalorder %v704_v24, 0 }
  0x78   : > { %497 = vperm.xlu1 %1986, %v434_v19   ;;  %492 = vperm.xlu0 %1985, %v433_v20   ;;  %v654_v19 = vpack.c.b16 %v626_v5, %v626_v5  ;;  %v643_v20 = vpack.c.b8 %v642_v6, %v642_v6  ;;  %v658_v47 = vpack.c.b16 %v628_v29, %v628_v29  ;;  %vm2432_vm10 = vcmp.ne.s32.totalorder %v697_v25, 0 }
  0x79   : > { %v699_v55 = vunpack.c.0.s8 %v2420_v44  ;;  %v644_v1 = vpack.c.b16 %v621_v34, %v621_v34  ;;  %v629_v2 = vunpack.c.3.s8 %v2366_v60  ;;  %vm2460_vm15 = vcmp.ne.s32.totalorder %v698_v45, 0 }
  0x7a   : > { %v655_v37 = vpack.c.b8 %v654_v19, %v654_v19  ;;  %vm2411_vm7 = vnez %v643_v20  ;;  %vm2464_vm0 = vcmp.ne.s32.totalorder %v705_v46, 0  ;;  %v659_v12 = vpack.c.b8 %v658_v47, %v658_v47 }
  0x7b   : > { %v2440_v56 = vsel %vm2411_vm7, 16843009, %v2150_v8  ;;  %v645_v19 = vpack.c.b8 %v644_v1, %v644_v1  ;;  %v660_v20 = vpack.c.b16 %v629_v2, %v629_v2 }
  0x7c   : > { %537 = vperm.xlu1 %1986, %v442_v21   ;;  %532 = vperm.xlu0 %1985, %v441_v22   ;;  %v627_v21 = vunpack.c.1.s8 %v2366_v60  ;;  %vm2444_vm12 = vnez %v655_v37  ;;  %v700_v27 = vunpack.c.0.s8 %v2440_v56 }
  0x7d   : > { %v690_v60 = vsel %vm2444_vm12, 16843009, %v2150_v8 }
  0x7e   : > { %v656_v39 = vpack.c.b16 %v627_v21, %v627_v21  ;;  %v706_v26 = vunpack.c.0.s8 %v690_v60  ;;  %vm2544_vm12 = vcmp.ne.s32.totalorder %v700_v27, 0 }
  0x80   : > { %v657_v57 = vpack.c.b8 %v656_v39, %v656_v39 }
  0xdf   : > { %v503_v16 = vpop.permute.xlu1 %502  ;;  %v463_v17 = vpop.permute.xlu0 %462 }
  0xe0   : > { %v554_v22 = vadd.f32 %v2376_v7, %v503_v16  ;;  %v546_v23 = vadd.f32 %v2376_v7, %v463_v17 }
  0xe2   : > { %v586_v30 = vmul.f32 0.2, %v554_v22  ;;  %v578_v31 = vmul.f32 0.2, %v546_v23  ;;  %vm562_vm3 = vcmp.gt.f32.partialorder %v546_v23, 0.0  ;;  %vm570_vm6 = vcmp.gt.f32.partialorder %v554_v22, 0.0 }
  0xe3   : > { %v508_v35 = vpop.permute.xlu1 %507  ;;  %v468_v36 = vpop.permute.xlu0 %467 }
  0xe4   : > { %v555_v40 = vadd.f32 %v2376_v7, %v508_v35  ;;  %v547_v42 = vadd.f32 %v2376_v7, %v468_v36  ;;  %v594_v43 = vsel %vm562_vm3, %v546_v23, %v578_v31  ;;  %v602_v50 = vsel %vm570_vm6, %v554_v22, %v586_v30  ;;  %v2596_v35 = vld [vmem:[#allocation2 + $0x40] sm:$0xff] }
  0xe5   : > { %v2424_v41 = vsel %vm2378_vm13, %v594_v43, -1e+30  ;;  %v2454_v0 = vsel %vm2388_vm1, %v602_v50, -1e+30  ;;  %vm2473_vm1 = vnez %v657_v57  ;;  %v661_v36 = vpack.c.b8 %v660_v20, %v660_v20  ;;  %v2610_v43 = vld [vmem:[#allocation2 + $0x48] sm:$0xff] }
  0xe6   : > { %v587_v48 = vmul.f32 0.2, %v555_v40  ;;  %v579_v49 = vmul.f32 0.2, %v547_v42  ;;  %758 = vmax.xlane.f32.xlu0 %v2424_v41  ;;  %vm563_vm8 = vcmp.gt.f32.partialorder %v547_v42, 0.0  ;;  %vm571_vm11 = vcmp.gt.f32.partialorder %v555_v40, 0.0 }
  0xe7   : > { %v478_v53 = vpop.permute.xlu1 %477  ;;  %v473_v54 = vpop.permute.xlu0 %472  ;;  %v691_v32 = vsel %vm2473_vm1, 16843009, %v2150_v8 }
  0xe8   : > { %v549_v58 = vadd.f32 %v2376_v7, %v478_v53  ;;  %v548_v59 = vadd.f32 %v2376_v7, %v473_v54  ;;  %v595_v61 = vsel %vm563_vm8, %v547_v42, %v579_v49  ;;  %v603_v5 = vsel %vm571_vm11, %v555_v40, %v587_v48  ;;  %v2623_v49 = vld [vmem:[#allocation2 + $0x50] sm:$0xff] }
  0xe9   : > { %v2450_v63 = vsel %vm2384_vm14, %v595_v61, -1e+30  ;;  %v2483_v18 = vsel %vm2406_vm5, %v603_v5, -1e+30  ;;  %vm2506_vm5 = vnez %v645_v19  ;;  %vm2513_vm8 = vcmp.ne.s32.totalorder %v699_v55, 0 }
  0xea   : > { %v581_v3 = vmul.f32 0.2, %v549_v58  ;;  %v580_v4 = vmul.f32 0.2, %v548_v59  ;;  %760 = vmax.xlane.f32.xlu1 %v2450_v63  ;;  %774 = vmax.xlane.f32.xlu0 %v2454_v0  ;;  %vm564_vm13 = vcmp.gt.f32.partialorder %v548_v59, 0.0  ;;  %vm565_vm14 = vcmp.gt.f32.partialorder %v549_v58, 0.0 }
  0xeb   : > { %v518_v9 = vpop.permute.xlu1 %517  ;;  %v513_v10 = vpop.permute.xlu0 %512  ;;  %v707_v44 = vunpack.c.0.s8 %v691_v32  ;;  %v685_v52 = vsel %vm2506_vm5, 16843009, %v2150_v8  ;;  %v2594_v32 = vld [vmem:[#allocation2 + $0x8] sm:$0xff] }
  0xec   : > { %v557_v13 = vadd.f32 %v2376_v7, %v518_v9  ;;  %v556_v14 = vadd.f32 %v2376_v7, %v513_v10  ;;  %v596_v15 = vsel %vm564_vm13, %v548_v59, %v580_v4  ;;  %v597_v23 = vsel %vm565_vm14, %v549_v58, %v581_v3  ;;  %v2638_v59 = vld [vmem:[#allocation2 + $0x58] sm:$0xff] }
  0xed   : > { %v2479_v17 = vsel %vm2402_vm4, %v596_v15, -1e+30  ;;  %vm2489_vm4 = vnez %v659_v12  ;;  %v2504_v34 = vsel %vm2432_vm10, %v597_v23, -1e+30  ;;  %vm2537_vm10 = vnez %v661_v36  ;;  %v1988_v36 = vld [vmem:[%s2277_s8 + $0x8] sm:$0xff]  }
  0xee   : > { %v589_v21 = vmul.f32 0.2, %v557_v13  ;;  %v588_v22 = vmul.f32 0.2, %v556_v14  ;;  %762 = vmax.xlane.f32.xlu1 %v2479_v17  ;;  %776 = vmax.xlane.f32.xlu0 %v2483_v18  ;;  %vm572_vm2 = vcmp.gt.f32.partialorder %v556_v14, 0.0  ;;  %vm573_vm3 = vcmp.gt.f32.partialorder %v557_v13, 0.0 }
  0xef   : > { %v488_v24 = vpop.permute.xlu1 %487  ;;  %v483_v25 = vpop.permute.xlu0 %482  ;;  %v692_v45 = vsel %vm2489_vm4, 16843009, %v2150_v8  ;;  %v701_v6 = vunpack.c.0.s8 %v685_v52  ;;  %v693_v9 = vsel %vm2537_vm10, 16843009, %v2150_v8  ;;  %1877 = vmatprep.subr.bf16.mxu0 %v1988_v36  ;;  %1908 = vmatprep.subr.bf16.mxu1 %v1988_v36  ;;  %v2625_v52 = vld [vmem:[#allocation2 + $0x18] sm:$0xff] }
  0xf0   : > { %v551_v29 = vadd.f32 %v2376_v7, %v488_v24  ;;  %v550_v30 = vadd.f32 %v2376_v7, %v483_v25  ;;  %v604_v31 = vsel %vm572_vm2, %v556_v14, %v588_v22  ;;  %v605_v39 = vsel %vm573_vm3, %v557_v13, %v589_v21  ;;  %1878 = vmatpush3.bf16.msra.mxu0 %v1988_v36 }
  0xf1   : > { %v2500_v33 = vsel %vm2428_vm9, %v604_v31, -1e+30  ;;  %vm2522_vm9 = vcmp.ne.s32.totalorder %v706_v26, 0  ;;  %v2532_v51 = vsel %vm2464_vm0, %v605_v39, -1e+30  ;;  %v708_v61 = vunpack.c.0.s8 %v692_v45  ;;  %1916 = vmatpush3.bf16.msra.mxu1 %v1988_v36 }
  0xf2   : > { %v583_v37 = vmul.f32 0.2, %v551_v29  ;;  %v582_v38 = vmul.f32 0.2, %v550_v30  ;;  %778 = vmax.xlane.f32.xlu1 %v2500_v33  ;;  %764 = vmax.xlane.f32.xlu0 %v2504_v34  ;;  %vm566_vm6 = vcmp.gt.f32.partialorder %v550_v30, 0.0  ;;  %vm567_vm7 = vcmp.gt.f32.partialorder %v551_v29, 0.0 }
  0xf3   : > { %v528_v40 = vpop.permute.xlu1 %527  ;;  %v523_v42 = vpop.permute.xlu0 %522  ;;  %vm724_vm1 = vcmp.ne.s32.totalorder %v708_v61, 0  ;;  %vm717_vm2 = vcmp.ne.s32.totalorder %v701_v6, 0  ;;  %v709_v20 = vunpack.c.0.s8 %v693_v9  ;;  %v2651_v9 = vld [vmem:[#allocation2 + $0x60] sm:$0xff] }
  0xf4   : > { %v559_v46 = vadd.f32 %v2376_v7, %v528_v40  ;;  %v558_v47 = vadd.f32 %v2376_v7, %v523_v42  ;;  %v598_v48 = vsel %vm566_vm6, %v550_v30, %v582_v38  ;;  %v599_v56 = vsel %vm567_vm7, %v551_v29, %v583_v37  ;;  %v2589_v29 = vld [vmem:[#allocation2] sm:$0xff]  ;;  %v2608_v42 = vld [vmem:[#allocation2 + $0x10] sm:$0xff] }
  0xf5   : > { %v2528_v50 = vsel %vm2460_vm15, %v598_v48, -1e+30  ;;  %vm2550_vm15 = vcmp.ne.s32.totalorder %v707_v44, 0  ;;  %v2560_v5 = vsel %vm2513_vm8, %v599_v56, -1e+30  ;;  %vm725_vm5 = vcmp.ne.s32.totalorder %v709_v20, 0 }
  0xf6   : > { %v591_v54 = vmul.f32 0.2, %v559_v46  ;;  %v590_v55 = vmul.f32 0.2, %v558_v47  ;;  %766 = vmax.xlane.f32.xlu1 %v2528_v50  ;;  %780 = vmax.xlane.f32.xlu0 %v2532_v51  ;;  %vm574_vm11 = vcmp.gt.f32.partialorder %v558_v47, 0.0  ;;  %vm575_vm13 = vcmp.gt.f32.partialorder %v559_v46, 0.0 }
  0xf7   : > { %v498_v57 = vpop.permute.xlu1 %497  ;;  %v493_v58 = vpop.permute.xlu0 %492  ;;  %vm1239_vm6 = vcmask 7168   ;;  %vm1384_vm7 = vcmask 261120  }
  0xf8   : > { %v553_v62 = vadd.f32 %v2376_v7, %v498_v57  ;;  %v552_v1 = vadd.f32 %v2376_v7, %v493_v58  ;;  %v606_v2 = vsel %vm574_vm11, %v558_v47, %v590_v55  ;;  %v607_v60 = vsel %vm575_vm13, %v559_v46, %v591_v54  ;;  %v1989_v46 = vld [vmem:[%s2277_s8 + $0x10] sm:$0xff]   ;;  %v1990_v55 = vld [vmem:[%s2277_s8 + $0x18] sm:$0xff]   ;;  %v2636_v58 = vld [vmem:[#allocation2 + $0x20] sm:$0xff] }
  0xf9   : > { %v2556_v4 = vsel %vm2522_vm9, %v606_v2, -1e+30  ;;  %v2575_v19 = vsel %vm2550_vm15, %v607_v60, -1e+30  ;;  %1879 = vmatprep.subr.bf16.mxu0 %v1989_v46  ;;  %1909 = vmatprep.subr.bf16.mxu1 %v1989_v46  ;;  %v1991_v2 = vld [vmem:[%s2277_s8 + $0x20] sm:$0xff]  }
  0xfa   : > { %v585_v10 = vmul.f32 0.2, %v553_v62  ;;  %v584_v11 = vmul.f32 0.2, %v552_v1  ;;  %782 = vmax.xlane.f32.xlu1 %v2556_v4  ;;  %768 = vmax.xlane.f32.xlu0 %v2560_v5  ;;  %vm568_vm14 = vcmp.gt.f32.partialorder %v552_v1, 0.0  ;;  %vm569_vm0 = vcmp.gt.f32.partialorder %v553_v62, 0.0 }
  0xfb   : > { %v538_v12 = vpop.permute.xlu1 %537  ;;  %v533_v13 = vpop.permute.xlu0 %532  ;;  %1880 = vmatpush3.bf16.msra.mxu0 %v1989_v46  ;;  %1917 = vmatpush3.bf16.msra.mxu1 %v1989_v46 }
  0xfc   : > { %v561_v14 = vadd.f32 %v2376_v7, %v538_v12  ;;  %v560_v15 = vadd.f32 %v2376_v7, %v533_v13  ;;  %v600_v16 = vsel %vm568_vm14, %v552_v1, %v584_v11  ;;  %v601_v7 = vsel %vm569_vm0, %v553_v62, %v585_v10  ;;  %1881 = vmatprep.subr.bf16.mxu0 %v1990_v55  ;;  %v2653_v10 = vld [vmem:[#allocation2 + $0x28] sm:$0xff] }
  0xfd   : > { %v2571_v8 = vsel %vm2544_vm12, %v600_v16, -1e+30  ;;  %v2581_v25 = vsel %vm717_vm2, %v601_v7, -1e+30  ;;  %1910 = vmatprep.subr.bf16.mxu1 %v1990_v55 }
  0xfe   : > { %v593_v21 = vmul.f32 0.2, %v561_v14  ;;  %v592_v22 = vmul.f32 0.2, %v560_v15  ;;  %770 = vmax.xlane.f32.xlu1 %v2571_v8  ;;  %784 = vmax.xlane.f32.xlu0 %v2575_v19  ;;  %vm576_vm3 = vcmp.gt.f32.partialorder %v560_v15, 0.0  ;;  %vm577_vm4 = vcmp.gt.f32.partialorder %v561_v14, 0.0 }
  0xff   : > { %1882 = vmatpush3.bf16.msra.mxu0 %v1990_v55  ;;  %1918 = vmatpush3.bf16.msra.mxu1 %v1990_v55  ;;  %v757_v55 = vld [vmem:[#allocation2 + $0x78] sm:$0xff] }
 0x100   : > { %v608_v23 = vsel %vm576_vm3, %v560_v15, %v592_v22  ;;  %v609_v26 = vsel %vm577_vm4, %v561_v14, %v593_v21  ;;  %1883 = vmatprep.subr.bf16.mxu0 %v1991_v2  ;;  %1911 = vmatprep.subr.bf16.mxu1 %v1991_v2  ;;  %v1992_v15 = vld [vmem:[%s2277_s8 + $0x28] sm:$0xff]   ;;  %v748_v21 = vld [vmem:[#allocation2 + $0x30] sm:$0xff] }
 0x101   : > { %v2579_v24 = vsel %vm724_vm1, %v608_v23, -1e+30  ;;  %v2585_v27 = vsel %vm725_vm5, %v609_v26, -1e+30  ;;  %v2667_v22 = vld [vmem:[#allocation2 + $0x68] sm:$0xff] }
 0x102   : > { %786 = vmax.xlane.f32.xlu1 %v2579_v24  ;;  %772 = vmax.xlane.f32.xlu0 %v2581_v25 }
 0x103   : > { %1884 = vmatpush3.bf16.msra.mxu0 %v1991_v2  ;;  %1919 = vmatpush3.bf16.msra.mxu1 %v1991_v2 }
 0x104   : > { %1885 = vmatprep.subr.bf16.mxu0 %v1992_v15  ;;  %1912 = vmatprep.subr.bf16.mxu1 %v1992_v15 }
 0x106   : > { %788 = vmax.xlane.f32.xlu0 %v2585_v27 }
 0x107   : > { %1886 = vmatpush3.bf16.msra.mxu0 %v1992_v15  ;;  %1920 = vmatpush3.bf16.msra.mxu1 %v1992_v15 }
 0x173   : > { %v759_v30 = vpop.xlane.xlu0 %758 }
 0x174   : > { %v2592_v31 = vmax.f32 %v2589_v29, %v759_v30 }
 0x176   : > { %1401 = vst.msk [vmem:[#allocation2] sm:$0xff] %vm1239_vm6, %v2592_v31  ;;  %856 = vperm.xlu1 %1986, %v2592_v31   ;;  %v806_v61 = vsub.f32 %v2589_v29, %v2592_v31  ;;  %v1993_v31 = vld [vmem:[%s2277_s8 + $0x30] sm:$0xff]  }
 0x177   : > { %v761_v37 = vpop.xlane.xlu1 %760  ;;  %v775_v38 = vpop.xlane.xlu0 %774  ;;  %1887 = vmatprep.subr.bf16.mxu0 %v1993_v31  ;;  %1913 = vmatprep.subr.bf16.mxu1 %v1993_v31 }
 0x178   : > { %v2603_v39 = vmax.f32 %v2594_v32, %v761_v37  ;;  %v2606_v40 = vmax.f32 %v2596_v35, %v775_v38  ;;  %v822_v60 = vmul.f32 1.442695, %v806_v61  ;;  %v2679_v37 = vld [vmem:[#allocation2 + $0x70] sm:$0xff]  ;;  %v749_v38 = vld [vmem:[#allocation2 + $0x38] sm:$0xff]  ;;  %1888 = vmatpush3.bf16.msra.mxu0 %v1993_v31  ;;  %1921 = vmatpush3.bf16.msra.mxu1 %v1993_v31 }
 0x17a   : > { %1402 = vst.msk [vmem:[#allocation2 + $0x8] sm:$0xff] %vm1239_vm6, %v2603_v39  ;;  %1409 = vst.msk [vmem:[#allocation2 + $0x40] sm:$0xff] %vm1239_vm6, %v2606_v40  ;;  %861 = vperm.xlu0 %1985, %v2603_v39   ;;  %896 = vperm.xlu1 %1986, %v2606_v40   ;;  %v807_v11 = vsub.f32 %v2594_v32, %v2603_v39  ;;  %1995 = vpow2.f32 %v822_v60 }
 0x17b   : > { %v763_v44 = vpop.xlane.xlu1 %762  ;;  %v777_v45 = vpop.xlane.xlu0 %776 }
 0x17c   : > { %v792_v47 = vmax.f32 %v2608_v42, %v763_v44  ;;  %v2621_v48 = vmax.f32 %v2610_v43, %v777_v45  ;;  %v824_v7 = vmul.f32 1.442695, %v807_v11 }
 0x17e   : > { %1403 = vst.msk [vmem:[#allocation2 + $0x10] sm:$0xff] %vm1239_vm6, %v792_v47  ;;  %1410 = vst.msk [vmem:[#allocation2 + $0x48] sm:$0xff] %vm1239_vm6, %v2621_v48  ;;  %866 = vperm.xlu0 %1985, %v792_v47   ;;  %901 = vperm.xlu1 %1986, %v2621_v48   ;;  %v808_v12 = vsub.f32 %v2608_v42, %v792_v47  ;;  %1997 = vpow2.f32 %v824_v7 }
 0x17f   : > { %v779_v53 = vpop.xlane.xlu1 %778  ;;  %v765_v54 = vpop.xlane.xlu0 %764 }
 0x180   : > { %v2633_v56 = vmax.f32 %v2623_v49, %v779_v53  ;;  %v793_v57 = vmax.f32 %v2625_v52, %v765_v54  ;;  %v826_v26 = vmul.f32 1.442695, %v808_v12 }
 0x182   : > { %1411 = vst.msk [vmem:[#allocation2 + $0x50] sm:$0xff] %vm1239_vm6, %v2633_v56  ;;  %1404 = vst.msk [vmem:[#allocation2 + $0x18] sm:$0xff] %vm1239_vm6, %v793_v57  ;;  %906 = vperm.xlu0 %1985, %v2633_v56   ;;  %871 = vperm.xlu1 %1986, %v793_v57   ;;  %v809_v23 = vsub.f32 %v2625_v52, %v793_v57  ;;  %1999 = vpow2.f32 %v826_v26  ;;  %v1994_v52 = vld [vmem:[%s2277_s8 + $0x38] sm:$0xff]   ;;  %v814_v57 = vsub.f32 %v2596_v35, %v2606_v40  ;;  %s2151_s8 = smov 96  }
 0x183   : > { %v767_v62 = vpop.xlane.xlu1 %766  ;;  %v781_v1 = vpop.xlane.xlu0 %780  ;;  %1889 = vmatprep.subr.bf16.mxu0 %v1994_v52  ;;  %1914 = vmatprep.subr.bf16.mxu1 %v1994_v52  ;;  %v815_v35 = vsub.f32 %v2610_v43, %v2621_v48  ;;  %v816_v40 = vsub.f32 %v2623_v49, %v2633_v56 }
 0x184   : > { %v794_v3 = vmax.f32 %v2636_v58, %v767_v62  ;;  %v2649_v6 = vmax.f32 %v2638_v59, %v781_v1  ;;  %v828_v39 = vmul.f32 1.442695, %v809_v23  ;;  %1890 = vmatpush3.bf16.msra.mxu0 %v1994_v52  ;;  %1922 = vmatpush3.bf16.msra.mxu1 %v1994_v52 }
 0x185   : > { %v842_v48 = vmul.f32 1.442695, %v816_v40 }
 0x186   : > { %1405 = vst.msk [vmem:[#allocation2 + $0x20] sm:$0xff] %vm1239_vm6, %v794_v3  ;;  %1412 = vst.msk [vmem:[#allocation2 + $0x58] sm:$0xff] %vm1239_vm6, %v2649_v6  ;;  %876 = vperm.xlu0 %1985, %v794_v3   ;;  %911 = vperm.xlu1 %1986, %v2649_v6   ;;  %v810_v28 = vsub.f32 %v2636_v58, %v794_v3  ;;  %2001 = vpow2.f32 %v828_v39  ;;  %v2692_v3 = vpop.eup %1995  ;;  %v817_v43 = vsub.f32 %v2638_v59, %v2649_v6 }
 0x187   : > { %v783_v13 = vpop.xlane.xlu1 %782  ;;  %v769_v14 = vpop.xlane.xlu0 %768 }
 0x188   : > { %v2664_v16 = vmax.f32 %v2651_v9, %v783_v13  ;;  %v795_v20 = vmax.f32 %v2653_v10, %v769_v14  ;;  %v830_v44 = vmul.f32 1.442695, %v810_v28  ;;  %v2700_v60 = vpop.eup %1997  ;;  %v840_v13 = vmul.f32 1.442695, %v815_v35 }
 0x189   : > { %v844_v15 = vmul.f32 1.442695, %v817_v43 }
 0x18a   : > { %1413 = vst.msk [vmem:[#allocation2 + $0x60] sm:$0xff] %vm1239_vm6, %v2664_v16  ;;  %1406 = vst.msk [vmem:[#allocation2 + $0x28] sm:$0xff] %vm1239_vm6, %v795_v20  ;;  %916 = vperm.xlu0 %1985, %v2664_v16   ;;  %881 = vperm.xlu1 %1986, %v795_v20   ;;  %v811_v42 = vsub.f32 %v2653_v10, %v795_v20  ;;  %2003 = vpow2.f32 %v830_v44  ;;  %v838_v10 = vmul.f32 1.442695, %v814_v57 }
 0x18b   : > { %v771_v29 = vpop.xlane.xlu1 %770  ;;  %v785_v30 = vpop.xlane.xlu0 %784  ;;  %v818_v14 = vsub.f32 %v2651_v9, %v2664_v16 }
 0x18c   : > { %v796_v32 = vmax.f32 %v748_v21, %v771_v29  ;;  %v2677_v36 = vmax.f32 %v2667_v22, %v785_v30  ;;  %v832_v58 = vmul.f32 1.442695, %v811_v42  ;;  %v2702_v12 = vpop.eup %1999 }
 0x18d   : > { %v846_v59 = vmul.f32 1.442695, %v818_v14 }
 0x18e   : > { %1407 = vst.msk [vmem:[#allocation2 + $0x30] sm:$0xff] %vm1239_vm6, %v796_v32  ;;  %1414 = vst.msk [vmem:[#allocation2 + $0x68] sm:$0xff] %vm1239_vm6, %v2677_v36  ;;  %886 = vperm.xlu0 %1985, %v796_v32   ;;  %921 = vperm.xlu1 %1986, %v2677_v36   ;;  %v812_v45 = vsub.f32 %v748_v21, %v796_v32  ;;  %2005 = vpow2.f32 %v832_v58  ;;  %v819_v20 = vsub.f32 %v2667_v22, %v2677_v36 }
 0x18f   : > { %v787_v46 = vpop.xlane.xlu1 %786  ;;  %v773_v47 = vpop.xlane.xlu0 %772 }
 0x190   : > { %v804_v53 = vmax.f32 %v2679_v37, %v787_v46  ;;  %v797_v54 = vmax.f32 %v749_v38, %v773_v47  ;;  %v834_v61 = vmul.f32 1.442695, %v812_v45  ;;  %v2710_v49 = vpop.eup %2001  ;;  %v848_v16 = vmul.f32 1.442695, %v819_v20 }
 0x192   : > { %1415 = vst.msk [vmem:[#allocation2 + $0x70] sm:$0xff] %vm1239_vm6, %v804_v53  ;;  %1408 = vst.msk [vmem:[#allocation2 + $0x38] sm:$0xff] %vm1239_vm6, %v797_v54  ;;  %926 = vperm.xlu0 %1985, %v804_v53   ;;  %891 = vperm.xlu1 %1986, %v797_v54   ;;  %v813_v62 = vsub.f32 %v749_v38, %v797_v54  ;;  %2007 = vpow2.f32 %v834_v61  ;;  %v820_v6 = vsub.f32 %v2679_v37, %v804_v53 }
 0x193   : > { %v789_v1 = vpop.xlane.xlu0 %788  ;;  %2009 = vpow2.f32 %v838_v10 }
 0x194   : > { %v805_v2 = vmax.f32 %v757_v55, %v789_v1  ;;  %v836_v11 = vmul.f32 1.442695, %v813_v62  ;;  %v2712_v56 = vpop.eup %2003  ;;  %v850_v22 = vmul.f32 1.442695, %v820_v6 }
 0x196   : > { %1416 = vst.msk [vmem:[#allocation2 + $0x78] sm:$0xff] %vm1239_vm6, %v805_v2  ;;  %1274 = vperm.xlu0 %1985, %v2692_v3   ;;  %931 = vperm.xlu1 %1986, %v805_v2   ;;  %2011 = vpow2.f32 %v836_v11  ;;  %v821_v7 = vsub.f32 %v757_v55, %v805_v2 }
 0x197   : > { %2013 = vpow2.f32 %v840_v13 }
 0x198   : > { %2015 = vpow2.f32 %v842_v48  ;;  %v2719_v21 = vpop.eup %2005  ;;  %v852_v28 = vmul.f32 1.442695, %v821_v7 }
 0x199   : > { %2017 = vpow2.f32 %v844_v15 }
 0x19a   : > { %1284 = vperm.xlu0 %1985, %v2702_v12   ;;  %1279 = vperm.xlu1 %1986, %v2700_v60   ;;  %2019 = vpow2.f32 %v846_v59 }
 0x19b   : > { %2021 = vpow2.f32 %v848_v16 }
 0x19c   : > { %v2721_v9 = vpop.eup %2007  ;;  %2023 = vpow2.f32 %v850_v22 }
 0x19d   : > { %v2725_v23 = vpop.eup %2009  ;;  %2025 = vpow2.f32 %v852_v28 }
 0x19e   : > { %1294 = vperm.xlu0 %1985, %v2712_v56   ;;  %1289 = vperm.xlu1 %1986, %v2710_v49  }
 0x1a0   : > { %v2727_v26 = vpop.eup %2011 }
 0x1a1   : > { %v2731_v29 = vpop.eup %2013 }
 0x1a2   : > { %1304 = vperm.xlu0 %1985, %v2721_v9   ;;  %1299 = vperm.xlu1 %1986, %v2719_v21   ;;  %v2733_v30 = vpop.eup %2015 }
 0x1a3   : > { %v2737_v31 = vpop.eup %2017 }
 0x1a4   : > { %v2739_v32 = vpop.eup %2019 }
 0x1a5   : > { %v2743_v36 = vpop.eup %2021 }
 0x1a6   : > { %1314 = vperm.xlu0 %1985, %v2725_v23   ;;  %1309 = vperm.xlu1 %1986, %v2727_v26   ;;  %v2745_v37 = vpop.eup %2023 }
 0x1a7   : > { %v2749_v38 = vpop.eup %2025 }
 0x1aa   : > { %1324 = vperm.xlu0 %1985, %v2733_v30   ;;  %1319 = vperm.xlu1 %1986, %v2731_v29  }
 0x1ae   : > { %1334 = vperm.xlu0 %1985, %v2739_v32   ;;  %1329 = vperm.xlu1 %1986, %v2737_v31  }
 0x1b2   : > { %1344 = vperm.xlu0 %1985, %v2745_v37   ;;  %1339 = vperm.xlu1 %1986, %v2743_v36  }
 0x1b6   : > { %1349 = vperm.xlu1 %1986, %v2749_v38  }
 0x1f5   : > { %v857_v39 = vpop.permute.xlu1 %856 }
 0x1f6   : > { %v934_v45 = vsub.f32 %v2424_v41, %v857_v39 }
 0x1f9   : > { %v897_v42 = vpop.permute.xlu1 %896  ;;  %v862_v44 = vpop.permute.xlu0 %861 }
 0x1fa   : > { %v935_v46 = vsub.f32 %v2450_v63, %v862_v44  ;;  %v942_v54 = vsub.f32 %v2454_v0, %v897_v42 }
 0x1fc   : > { %v950_v47 = vpack.c.bf16 %v935_v46, %v934_v45 }
 0x1fd   : > { %v902_v52 = vpop.permute.xlu1 %901  ;;  %v867_v53 = vpop.permute.xlu0 %866 }
 0x1fe   : > { %v943_v55 = vsub.f32 %v2483_v18, %v902_v52  ;;  %v959_v57 = vmul.bf16 1069105081, %v950_v47  ;;  %v936_v1 = vsub.f32 %v2479_v17, %v867_v53 }
 0x200   : > { %v954_v58 = vpack.c.bf16 %v943_v55, %v942_v54  ;;  %2027 = vpow.bf16 %v959_v57 }
 0x201   : > { %v872_v61 = vpop.permute.xlu1 %871  ;;  %v907_v62 = vpop.permute.xlu0 %906 }
 0x202   : > { %v937_v2 = vsub.f32 %v2504_v34, %v872_v61  ;;  %v971_v10 = vmul.bf16 1069105081, %v954_v58  ;;  %v944_v11 = vsub.f32 %v2500_v33, %v907_v62 }
 0x204   : > { %v951_v41 = vpack.c.bf16 %v937_v2, %v936_v1  ;;  %2029 = vpow.bf16 %v971_v10 }
 0x205   : > { %v912_v63 = vpop.permute.xlu1 %911  ;;  %v877_v35 = vpop.permute.xlu0 %876 }
 0x206   : > { %v962_v40 = vmul.bf16 1069105081, %v951_v41  ;;  %v945_v0 = vsub.f32 %v2532_v51, %v912_v63  ;;  %v938_v14 = vsub.f32 %v2528_v50, %v877_v35  ;;  %v1258_v41 = vld [vmem:[#allocation4 + $0x10] sm:$0xff]  ;;  %v1256_v35 = vld [vmem:[#allocation4] sm:$0xff] }
 0x208   : > { %2031 = vpow.bf16 %v962_v40  ;;  %v955_v18 = vpack.c.bf16 %v945_v0, %v944_v11  ;;  %v1259_v40 = vld [vmem:[#allocation4 + $0x18] sm:$0xff]  ;;  %v1257_v11 = vld [vmem:[#allocation4 + $0x8] sm:$0xff] }
 0x209   : > { %v882_v13 = vpop.permute.xlu1 %881  ;;  %v917_v43 = vpop.permute.xlu0 %916 }
 0x20a   : > { %v974_v48 = vmul.bf16 1069105081, %v955_v18  ;;  %v939_v17 = vsub.f32 %v2560_v5, %v882_v13  ;;  %v946_v33 = vsub.f32 %v2556_v4, %v917_v43  ;;  %v1266_v13 = vld [vmem:[#allocation4 + $0x50] sm:$0xff] }
 0x20b   : > { %v2028_v34 = vpop.eup %2027 }
 0x20c   : > { %2033 = vpow.bf16 %v974_v48  ;;  %v952_v15 = vpack.c.bf16 %v939_v17, %v938_v14  ;;  %1891 = vmatprep.mubr.bf16.mxu0 %v2028_v34  ;;  %v1264_v17 = vld [vmem:[#allocation4 + $0x40] sm:$0xff] }
 0x20d   : > { %v922_v20 = vpop.permute.xlu1 %921  ;;  %v887_v59 = vpop.permute.xlu0 %886 }
 0x20e   : > { %v965_v6 = vmul.bf16 1069105081, %v952_v15  ;;  %v947_v51 = vsub.f32 %v2575_v19, %v922_v20  ;;  %v940_v50 = vsub.f32 %v2571_v8, %v887_v59  ;;  %v1267_v59 = vld [vmem:[#allocation4 + $0x58] sm:$0xff] }
 0x20f   : > { %v2030_v16 = vpop.eup %2029 }
 0x210   : > { %2035 = vpow.bf16 %v965_v6  ;;  %v956_v22 = vpack.c.bf16 %v947_v51, %v946_v33  ;;  %1899 = vmatprep.mubr.bf16.mxu1 %v2030_v16  ;;  %v1265_v16 = vld [vmem:[#allocation4 + $0x48] sm:$0xff] }
 0x211   : > { %v892_v7 = vpop.permute.xlu1 %891  ;;  %v927_v42 = vpop.permute.xlu0 %926 }
 0x212   : > { %v977_v28 = vmul.bf16 1069105081, %v956_v22  ;;  %v941_v5 = vsub.f32 %v2581_v25, %v892_v7  ;;  %v948_v4 = vsub.f32 %v2579_v24, %v927_v42 }
 0x213   : > { %v2032_v39 = vpop.eup %2031 }
 0x214   : > { %2037 = vpow.bf16 %v977_v28  ;;  %v953_v44 = vpack.c.bf16 %v941_v5, %v940_v50  ;;  %1892 = vmatmul.mubr.bf16.vlgmr.msra.gmra.mrb[0].mxu0 %v2032_v39 }
 0x215   : > { %v932_v45 = vpop.permute.xlu1 %931  ;;  %v1275_v57 = vpop.permute.xlu0 %1274 }
 0x216   : > { %v968_v46 = vmul.bf16 1069105081, %v953_v44  ;;  %v949_v19 = vsub.f32 %v2585_v27, %v932_v45  ;;  %v1352_v18 = vmul.f32 %v1275_v57, %v1256_v35  ;;  %v1263_v57 = vld [vmem:[#allocation4 + $0x38] sm:$0xff] }
 0x217   : > { %v2034_v47 = vpop.eup %2033 }
 0x218   : > { %2039 = vpow.bf16 %v968_v46  ;;  %v957_v52 = vpack.c.bf16 %v949_v19, %v948_v4  ;;  %1900 = vmatmul.mubr.bf16.vlgmr.msra.gmra.mrb[0].mxu1 %v2034_v47 }
 0x219   : > { %v1280_v58 = vpop.permute.xlu1 %1279  ;;  %v1285_v61 = vpop.permute.xlu0 %1284 }
 0x21a   : > { %v980_v53 = vmul.bf16 1069105081, %v957_v52  ;;  %v1354_v0 = vmul.f32 %v1285_v61, %v1258_v41  ;;  %v1353_v20 = vmul.f32 %v1280_v58, %v1257_v11  ;;  %v1261_v58 = vld [vmem:[#allocation4 + $0x28] sm:$0xff] }
 0x21b   : > { %v2036_v54 = vpop.eup %2035 }
 0x21c   : > { %2041 = vpow.bf16 %v980_v53  ;;  %1895 = vmatprep.mubr.bf16.mxu0 %v2036_v54 }
 0x21d   : > { %v1290_v24 = vpop.permute.xlu1 %1289  ;;  %v2768_v62 = vpop.permute.xlu0 %1294 }
 0x21e   : > { %v1355_v14 = vmul.f32 %v1290_v24, %v1259_v40  ;;  %v1268_v40 = vld [vmem:[#allocation4 + $0x60] sm:$0xff] }
 0x21f   : > { %v2038_v8 = vpop.eup %2037 }
 0x220   : > { %1903 = vmatprep.mubr.bf16.mxu1 %v2038_v8  ;;  %v1262_v8 = vld [vmem:[#allocation4 + $0x30] sm:$0xff] }
 0x221   : > { %v2770_v27 = vpop.permute.xlu1 %1299  ;;  %v1305_v1 = vpop.permute.xlu0 %1304 }
 0x222   : > { %v1358_v61 = vmul.f32 %v1305_v1, %v1262_v8 }
 0x223   : > { %v2040_v25 = vpop.eup %2039 }
 0x224   : > { %1896 = vmatmul.mubr.bf16.gmra.mrb[4].mxu0 %v2040_v25 }
 0x225   : > { %v2772_v2 = vpop.permute.xlu1 %1309  ;;  %v1315_v10 = vpop.permute.xlu0 %1314 }
 0x226   : > { %v1360_v50 = vmul.f32 %v1315_v10, %v1264_v17  ;;  %v1270_v10 = vld [vmem:[#allocation4 + $0x70] sm:$0xff]  ;;  %v1359_v35 = vmul.f32 %v2772_v2, %v1263_v57 }
 0x227   : > { %v2042_v55 = vpop.eup %2041 }
 0x228   : > { %1904 = vmatmul.mubr.bf16.gmra.mrb[4].mxu1 %v2042_v55  ;;  %v1260_v55 = vld [vmem:[#allocation4 + $0x20] sm:$0xff] }
 0x229   : > { %v1320_v63 = vpop.permute.xlu1 %1319  ;;  %v1325_v43 = vpop.permute.xlu0 %1324  ;;  %v1356_v24 = vmul.f32 %v2768_v62, %v1260_v55  ;;  %v1128_v55 = vld [vmem:[#allocation3 + $0x8] sm:$0xff] }
 0x22a   : > { %v1362_v22 = vmul.f32 %v1325_v43, %v1266_v13  ;;  %v1361_v46 = vmul.f32 %v1320_v63, %v1265_v16  ;;  %v1271_v13 = vld [vmem:[#allocation4 + $0x78] sm:$0xff] }
 0x22d   : > { %v1330_v6 = vpop.permute.xlu1 %1329  ;;  %v1335_v54 = vpop.permute.xlu0 %1334 }
 0x22e   : > { %v1363_v42 = vmul.f32 %v1330_v6, %v1267_v59  ;;  %v1364_v2 = vmul.f32 %v1335_v54, %v1268_v40  ;;  %v1127_v54 = vld [vmem:[#allocation3] sm:$0xff]  ;;  %v1133_v40 = vld [vmem:[#allocation3 + $0x30] sm:$0xff] }
 0x231   : > { %v1340_v25 = vpop.permute.xlu1 %1339  ;;  %v1345_v41 = vpop.permute.xlu0 %1344 }
 0x232   : > { %v1366_v17 = vmul.f32 %v1345_v41, %v1270_v10  ;;  %v1136_v41 = vld [vmem:[#allocation3 + $0x48] sm:$0xff] }
 0x235   : > { %v1350_v43 = vpop.permute.xlu1 %1349 }
 0x236   : > { %v1367_v59 = vmul.f32 %v1350_v43, %v1271_v13 }
 0x2e7   : > { %v1893_v48 = vpop.f32.mrb[0].mxu0 }
 0x2e8   : > { %v1370_v34 = vadd.f32 %v1893_v48, %v1354_v0  ;;  %1179 = vrot.lane.b32.xlu0 %v1893_v48, %s2151_s8  ;;  %v1064_v15 = vpop.f32.mrb[1].mxu0 }
 0x2e9   : > { %v1368_v33 = vadd.f32 %v1352_v18, %v1064_v15  ;;  %v1894_v51 = vpop.f32.mrb[2].mxu0  ;;  %v1357_v18 = vmul.f32 %v2770_v27, %v1261_v58 }
 0x2ea   : > { %1387 = vst.msk [vmem:[#allocation4 + $0x10] sm:$0xff] %vm1384_vm7, %v1370_v34  ;;  %v1371_v7 = vadd.f32 %v1894_v51, %v1355_v14  ;;  %1181 = vrot.lane.b32.xlu1 %v1894_v51, %s2151_s8  ;;  %v1067_v28 = vpop.f32.mrb[3].mxu0  ;;  %v1269_v14 = vld [vmem:[#allocation4 + $0x68] sm:$0xff] }
 0x2eb   : > { %1385 = vst.msk [vmem:[#allocation4] sm:$0xff] %vm1384_vm7, %v1368_v33  ;;  %v1369_v5 = vadd.f32 %v1353_v20, %v1067_v28  ;;  %v1901_v39 = vpop.f32.mrb[0].mxu1  ;;  %v1365_v33 = vmul.f32 %v1340_v25, %v1269_v14 }
 0x2ec   : > { %1388 = vst.msk [vmem:[#allocation4 + $0x18] sm:$0xff] %vm1384_vm7, %v1371_v7  ;;  %v1378_v44 = vadd.f32 %v1901_v39, %v1362_v22  ;;  %1195 = vrot.lane.b32.xlu0 %v1901_v39, %s2151_s8  ;;  %v1096_v45 = vpop.f32.mrb[1].mxu1 }
 0x2ed   : > { %1386 = vst.msk [vmem:[#allocation4 + $0x8] sm:$0xff] %vm1384_vm7, %v1369_v5  ;;  %v1376_v4 = vadd.f32 %v1360_v50, %v1096_v45  ;;  %v1902_v19 = vpop.f32.mrb[2].mxu1  ;;  %v1129_v50 = vld [vmem:[#allocation3 + $0x10] sm:$0xff]  ;;  %v1130_v5 = vld [vmem:[#allocation3 + $0x18] sm:$0xff] }
 0x2ee   : > { %1395 = vst.msk [vmem:[#allocation4 + $0x50] sm:$0xff] %vm1384_vm7, %v1378_v44  ;;  %v1379_v47 = vadd.f32 %v1902_v19, %v1363_v42  ;;  %1197 = vrot.lane.b32.xlu1 %v1902_v19, %s2151_s8  ;;  %v1099_v52 = vpop.f32.mrb[3].mxu1  ;;  %v1145_v39 = vmul.f32 %v2702_v12, %v1129_v50  ;;  %v1137_v44 = vld [vmem:[#allocation3 + $0x50] sm:$0xff]  ;;  %v1138_v19 = vld [vmem:[#allocation3 + $0x58] sm:$0xff] }
 0x2ef   : > { %1393 = vst.msk [vmem:[#allocation4 + $0x40] sm:$0xff] %vm1384_vm7, %v1376_v4  ;;  %v1377_v53 = vadd.f32 %v1361_v46, %v1099_v52  ;;  %v1146_v46 = vmul.f32 %v2710_v49, %v1130_v5  ;;  %v1154_v25 = vmul.f32 %v2737_v31, %v1138_v19  ;;  %v1143_v49 = vmul.f32 %v2692_v3, %v1127_v54 }
 0x2f0   : > { %1396 = vst.msk [vmem:[#allocation4 + $0x58] sm:$0xff] %vm1384_vm7, %v1379_v47  ;;  %1175 = vrot.lane.b32.xlu0 %v1064_v15, %s2151_s8  ;;  %v1152_v3 = vmul.f32 %v2731_v29, %v1136_v41 }
 0x2f1   : > { %1394 = vst.msk [vmem:[#allocation4 + $0x48] sm:$0xff] %vm1384_vm7, %v1377_v53 }
 0x2f2   : > { %1177 = vrot.lane.b32.xlu1 %v1067_v28, %s2151_s8 }
 0x2f4   : > { %1191 = vrot.lane.b32.xlu0 %v1096_v45, %s2151_s8 }
 0x2f6   : > { %1193 = vrot.lane.b32.xlu1 %v1099_v52, %s2151_s8  ;;  %v1153_v52 = vmul.f32 %v2733_v30, %v1137_v44  ;;  %v1144_v30 = vmul.f32 %v2700_v60, %v1128_v55  ;;  %v1149_v60 = vmul.f32 %v2721_v9, %v1133_v40 }
 0x2f7   : > { %v1897_v63 = vpop.f32.mrb[4].mxu0 }
 0x2f8   : > { %v1374_v11 = vadd.f32 %v1897_v63, %v1358_v61  ;;  %1187 = vrot.lane.b32.xlu0 %v1897_v63, %s2151_s8  ;;  %v1080_v0 = vpop.f32.mrb[5].mxu0  ;;  %v1135_v61 = vld [vmem:[#allocation3 + $0x40] sm:$0xff] }
 0x2f9   : > { %v1372_v48 = vadd.f32 %v1356_v24, %v1080_v0  ;;  %v1898_v1 = vpop.f32.mrb[6].mxu0  ;;  %v1151_v31 = vmul.f32 %v2725_v23, %v1135_v61 }
 0x2fa   : > { %1391 = vst.msk [vmem:[#allocation4 + $0x30] sm:$0xff] %vm1384_vm7, %v1374_v11  ;;  %v1375_v62 = vadd.f32 %v1898_v1, %v1359_v35  ;;  %1189 = vrot.lane.b32.xlu1 %v1898_v1, %s2151_s8  ;;  %v1083_v34 = vpop.f32.mrb[7].mxu0 }
 0x2fb   : > { %1389 = vst.msk [vmem:[#allocation4 + $0x20] sm:$0xff] %vm1384_vm7, %v1372_v48  ;;  %v1373_v15 = vadd.f32 %v1357_v18, %v1083_v34  ;;  %v1905_v20 = vpop.f32.mrb[4].mxu1  ;;  %v1134_v18 = vld [vmem:[#allocation3 + $0x38] sm:$0xff]  ;;  %v1131_v48 = vld [vmem:[#allocation3 + $0x20] sm:$0xff] }
 0x2fc   : > { %1392 = vst.msk [vmem:[#allocation4 + $0x38] sm:$0xff] %vm1384_vm7, %v1375_v62  ;;  %v1382_v27 = vadd.f32 %v1905_v20, %v1366_v17  ;;  %1183 = vrot.lane.b32.xlu0 %v1080_v0, %s2151_s8  ;;  %v1112_v6 = vpop.f32.mrb[5].mxu1  ;;  %v1150_v23 = vmul.f32 %v2727_v26, %v1134_v18  ;;  %v1132_v17 = vld [vmem:[#allocation3 + $0x28] sm:$0xff]  ;;  %v1147_v29 = vmul.f32 %v2712_v56, %v1131_v48 }
 0x2fd   : > { %1390 = vst.msk [vmem:[#allocation4 + $0x28] sm:$0xff] %vm1384_vm7, %v1373_v15  ;;  %v1380_v51 = vadd.f32 %v1364_v2, %v1112_v6  ;;  %v1906_v16 = vpop.f32.mrb[6].mxu1  ;;  %v1139_v2 = vld [vmem:[#allocation3 + $0x60] sm:$0xff]  ;;  %v1148_v9 = vmul.f32 %v2719_v21, %v1132_v17 }
 0x2fe   : > { %1399 = vst.msk [vmem:[#allocation4 + $0x70] sm:$0xff] %vm1384_vm7, %v1382_v27  ;;  %v1383_v22 = vadd.f32 %v1906_v16, %v1367_v59  ;;  %1185 = vrot.lane.b32.xlu1 %v1083_v34, %s2151_s8  ;;  %v1115_v7 = vpop.f32.mrb[7].mxu1  ;;  %v1140_v59 = vld [vmem:[#allocation3 + $0x68] sm:$0xff]  ;;  %v1155_v26 = vmul.f32 %v2739_v32, %v1139_v2 }
 0x2ff   : > { %1397 = vst.msk [vmem:[#allocation4 + $0x60] sm:$0xff] %vm1384_vm7, %v1380_v51  ;;  %v1381_v28 = vadd.f32 %v1365_v33, %v1115_v7  ;;  %v1141_v33 = vld [vmem:[#allocation3 + $0x70] sm:$0xff]  ;;  %v1156_v56 = vmul.f32 %v2743_v36, %v1140_v59 }
 0x300   : > { %1400 = vst.msk [vmem:[#allocation4 + $0x78] sm:$0xff] %vm1384_vm7, %v1383_v22  ;;  %1199 = vrot.lane.b32.xlu0 %v1112_v6, %s2151_s8  ;;  %v1142_v22 = vld [vmem:[#allocation3 + $0x78] sm:$0xff]  ;;  %v1157_v21 = vmul.f32 %v2745_v37, %v1141_v33 }
 0x301   : > { %1398 = vst.msk [vmem:[#allocation4 + $0x68] sm:$0xff] %vm1384_vm7, %v1381_v28  ;;  %v1158_v32 = vmul.f32 %v2749_v38, %v1142_v22 }
 0x302   : > { %1201 = vrot.lane.b32.xlu1 %v1115_v7, %s2151_s8 }
 0x304   : > { %1203 = vrot.lane.b32.xlu0 %v1905_v20, %s2151_s8 }
 0x306   : > { %1205 = vrot.lane.b32.xlu1 %v1906_v16, %s2151_s8 }
 0x35a   : > { %v1180_v42 = vpop.permute.xlu0 %1179 }
 0x35b   : > { %v1225_v45 = vadd.f32 %v1180_v42, %v1145_v39 }
 0x35c   : > { %v1182_v4 = vpop.permute.xlu1 %1181 }
 0x35d   : > { %1242 = vst.msk [vmem:[#allocation3 + $0x10] sm:$0xff] %vm1239_vm6, %v1225_v45  ;;  %v1226_v47 = vadd.f32 %v1182_v4, %v1146_v46 }
 0x35e   : > { %v1196_v53 = vpop.permute.xlu0 %1195 }
 0x35f   : > { %1243 = vst.msk [vmem:[#allocation3 + $0x18] sm:$0xff] %vm1239_vm6, %v1226_v47  ;;  %v1233_v8 = vadd.f32 %v1196_v53, %v1153_v52 }
 0x360   : > { %v1198_v12 = vpop.permute.xlu1 %1197 }
 0x361   : > { %1250 = vst.msk [vmem:[#allocation3 + $0x50] sm:$0xff] %vm1239_vm6, %v1233_v8  ;;  %v1234_v57 = vadd.f32 %v1198_v12, %v1154_v25 }
 0x362   : > { %v1176_v58 = vpop.permute.xlu0 %1175 }
 0x363   : > { %1251 = vst.msk [vmem:[#allocation3 + $0x58] sm:$0xff] %vm1239_vm6, %v1234_v57  ;;  %v1223_v24 = vadd.f32 %v1176_v58, %v1143_v49 }
 0x364   : > { %v1178_v10 = vpop.permute.xlu1 %1177 }
 0x365   : > { %1240 = vst.msk [vmem:[#allocation3] sm:$0xff] %vm1239_vm6, %v1223_v24  ;;  %v1224_v63 = vadd.f32 %v1178_v10, %v1144_v30 }
 0x366   : > { %v1192_v35 = vpop.permute.xlu0 %1191 }
 0x367   : > { %1241 = vst.msk [vmem:[#allocation3 + $0x8] sm:$0xff] %vm1239_vm6, %v1224_v63  ;;  %v1231_v11 = vadd.f32 %v1192_v35, %v1151_v31 }
 0x368   : > { %v1194_v0 = vpop.permute.xlu1 %1193 }
 0x369   : > { %1248 = vst.msk [vmem:[#allocation3 + $0x40] sm:$0xff] %vm1239_vm6, %v1231_v11  ;;  %v1232_v13 = vadd.f32 %v1194_v0, %v1152_v3 }
 0x36a   : > { %v1188_v43 = vpop.permute.xlu0 %1187 }
 0x36b   : > { %1249 = vst.msk [vmem:[#allocation3 + $0x48] sm:$0xff] %vm1239_vm6, %v1232_v13  ;;  %v1229_v1 = vadd.f32 %v1188_v43, %v1149_v60 }
 0x36c   : > { %v1190_v14 = vpop.permute.xlu1 %1189 }
 0x36d   : > { %1246 = vst.msk [vmem:[#allocation3 + $0x30] sm:$0xff] %vm1239_vm6, %v1229_v1  ;;  %v1230_v62 = vadd.f32 %v1190_v14, %v1150_v23 }
 0x36e   : > { %v1184_v34 = vpop.permute.xlu0 %1183 }
 0x36f   : > { %1247 = vst.msk [vmem:[#allocation3 + $0x38] sm:$0xff] %vm1239_vm6, %v1230_v62  ;;  %v1227_v15 = vadd.f32 %v1184_v34, %v1147_v29 }
 0x370   : > { %v1186_v20 = vpop.permute.xlu1 %1185 }
 0x371   : > { %1244 = vst.msk [vmem:[#allocation3 + $0x20] sm:$0xff] %vm1239_vm6, %v1227_v15  ;;  %v1228_v27 = vadd.f32 %v1186_v20, %v1148_v9 }
 0x372   : > { %v1200_v6 = vpop.permute.xlu0 %1199 }
 0x373   : > { %1245 = vst.msk [vmem:[#allocation3 + $0x28] sm:$0xff] %vm1239_vm6, %v1228_v27  ;;  %v1235_v51 = vadd.f32 %v1200_v6, %v1155_v26 }
 0x374   : > { %v1202_v16 = vpop.permute.xlu1 %1201 }
 0x375   : > { %1252 = vst.msk [vmem:[#allocation3 + $0x60] sm:$0xff] %vm1239_vm6, %v1235_v51  ;;  %v1236_v7 = vadd.f32 %v1202_v16, %v1156_v56 }
 0x376   : > { %v1204_v28 = vpop.permute.xlu0 %1203 }
 0x377   : > { %1253 = vst.msk [vmem:[#allocation3 + $0x68] sm:$0xff] %vm1239_vm6, %v1236_v7  ;;  %v1237_v50 = vadd.f32 %v1204_v28, %v1157_v21 }
 0x378   : > { %v1206_v5 = vpop.permute.xlu1 %1205 }
 0x379   : > { %1254 = vst.msk [vmem:[#allocation3 + $0x70] sm:$0xff] %vm1239_vm6, %v1237_v50  ;;  %v1238_v39 = vadd.f32 %v1206_v5, %v1158_v32 }
 0x37b   : > { %1255 = vst.msk [vmem:[#allocation3 + $0x78] sm:$0xff] %vm1239_vm6, %v1238_v39 }
 0x37c PF: > { %p1822_p6 = scmp.ne.s32.totalorder %s2129_s28, 1 }
 0x37d   : > { %v1423_v36 = vld [vmem:[#allocation3 + $0x10] sm:$0xff] (!%p1822_p6)  ;;  %v1421_v42 = vld [vmem:[#allocation3] sm:$0xff] (!%p1822_p6)  ;;  %v1424_v44 = vld [vmem:[#allocation3 + $0x18] sm:$0xff] (!%p1822_p6)  ;;  %v2152_v37 = vmov (!%p1822_p6), 0   ;;  %vm1668_vm8 = vcmask (!%p1822_p6), 257024  }
 0x37e   : > { %1420 = sbr.rel (%p1822_p6) target bundleno = 1071 (0x42f), region = 90  ;;  %2044 = vset.pattern.permute.xlu1 (!%p1822_p6), %v2152_v37  ;;  %2043 = vset.pattern.permute.xlu0 (!%p1822_p6), %v2152_v37  ;;  %2045 = vrcp.f32 (!%p1822_p6), %v1423_v36  ;;  %v1422_v45 = vld [vmem:[#allocation3 + $0x8] sm:$0xff] (!%p1822_p6)  ;;  %v1425_v46 = vld [vmem:[#allocation3 + $0x20] sm:$0xff] (!%p1822_p6)  ;;  %v1428_v4 = vld [vmem:[#allocation3 + $0x38] sm:$0xff] (!%p1822_p6) }
 0x37f   : > { %2047 = vrcp.f32 (!%p1822_p6), %v1421_v42  ;;  %v1426_v38 = vld [vmem:[#allocation3 + $0x28] sm:$0xff] (!%p1822_p6)  ;;  %v1427_v19 = vld [vmem:[#allocation3 + $0x30] sm:$0xff] (!%p1822_p6)  ;;  %v1429_v8 = vld [vmem:[#allocation3 + $0x40] sm:$0xff] (!%p1822_p6) }
 0x380   : > { %2049 = vrcp.f32 (!%p1822_p6), %v1424_v44  ;;  %v1430_v53 = vld [vmem:[#allocation3 + $0x48] sm:$0xff] (!%p1822_p6)  ;;  %v1432_v12 = vld [vmem:[#allocation3 + $0x58] sm:$0xff] (!%p1822_p6)  ;;  %v1431_v57 = vld [vmem:[#allocation3 + $0x50] sm:$0xff] (!%p1822_p6) }
 0x381   : > { %2051 = vrcp.f32 (!%p1822_p6), %v1422_v45  ;;  %v1434_v58 = vld [vmem:[#allocation3 + $0x68] sm:$0xff] (!%p1822_p6)  ;;  %v1433_v24 = vld [vmem:[#allocation3 + $0x60] sm:$0xff] (!%p1822_p6)  ;;  %v1435_v63 = vld [vmem:[#allocation3 + $0x70] sm:$0xff] (!%p1822_p6) }
 0x382   : > { %2053 = vrcp.f32 (!%p1822_p6), %v1426_v38  ;;  %v1436_v10 = vld [vmem:[#allocation3 + $0x78] sm:$0xff] (!%p1822_p6)  ;;  %v1455_v13 = vld [vmem:[#allocation4 + $0x10] sm:$0xff] (!%p1822_p6)  ;;  %v1453_v60 = vld [vmem:[#allocation4] sm:$0xff] (!%p1822_p6) }
 0x383   : > { %2055 = vrcp.f32 (!%p1822_p6), %v1425_v46  ;;  %v2845_v43 = vld [vmem:[%s2921_s5] ss:$0 sm:$0xff] (!%p1822_p6)  ;;  %v1456_v17 = vld [vmem:[#allocation4 + $0x18] sm:$0xff] (!%p1822_p6)  ;;  %v1454_v29 = vld [vmem:[#allocation4 + $0x8] sm:$0xff] (!%p1822_p6) }
 0x384   : > { %2057 = vrcp.f32 (!%p1822_p6), %v1428_v4  ;;  %v1458_v26 = vld [vmem:[#allocation4 + $0x28] sm:$0xff] (!%p1822_p6)  ;;  %v1457_v51 = vld [vmem:[#allocation4 + $0x20] sm:$0xff] (!%p1822_p6)  ;;  %v1460_v5 = vld [vmem:[#allocation4 + $0x38] sm:$0xff] (!%p1822_p6) }
 0x385   : > { %2059 = vrcp.f32 %v1427_v19  ;;  %v1459_v42 = vld [vmem:[#allocation4 + $0x30] sm:$0xff] }
 0x386   : > { %2061 = vrcp.f32 %v1430_v53 }
 0x387   : > { %2063 = vrcp.f32 %v1429_v8  ;;  %v1461_v8 = vld [vmem:[#allocation4 + $0x40] sm:$0xff] }
 0x388   : > { %v2046_v47 = vpop.eup %2045  ;;  %2065 = vrcp.f32 %v1432_v12 }
 0x389   : > { %v2048_v52 = vpop.eup %2047  ;;  %1481 = vperm.xlu1 %2044, %v2046_v47   ;;  %2067 = vrcp.f32 %v1431_v57 }
 0x38a   : > { %v2050_v54 = vpop.eup %2049  ;;  %1471 = vperm.xlu0 %2043, %v2048_v52   ;;  %2069 = vrcp.f32 %v1434_v58  ;;  %v1462_v52 = vld [vmem:[#allocation4 + $0x48] sm:$0xff] }
 0x38b   : > { %v2052_v25 = vpop.eup %2051  ;;  %2071 = vrcp.f32 %v1433_v24 }
 0x38c   : > { %v2054_v55 = vpop.eup %2053  ;;  %2073 = vrcp.f32 %v1436_v10 }
 0x38d   : > { %1486 = vperm.xlu1 %2044, %v2050_v54   ;;  %v2056_v49 = vpop.eup %2055  ;;  %2075 = vrcp.f32 %v1435_v63  ;;  %v1463_v63 = vld [vmem:[#allocation4 + $0x50] sm:$0xff] }
 0x38e   : > { %1476 = vperm.xlu0 %2043, %v2052_v25   ;;  %v2058_v61 = vpop.eup %2057 }
 0x38f   : > { %v2060_v30 = vpop.eup %2059 }
 0x390   : > { %v2062_v41 = vpop.eup %2061 }
 0x391   : > { %1496 = vperm.xlu1 %2044, %v2054_v55   ;;  %v2064_v31 = vpop.eup %2063 }
 0x392   : > { %1491 = vperm.xlu0 %2043, %v2056_v49   ;;  %v2066_v35 = vpop.eup %2065 }
 0x393   : > { %v2068_v40 = vpop.eup %2067 }
 0x394   : > { %v2070_v11 = vpop.eup %2069 }
 0x395   : > { %1506 = vperm.xlu1 %2044, %v2058_v61   ;;  %v2072_v3 = vpop.eup %2071 }
 0x396   : > { %1501 = vperm.xlu0 %2043, %v2060_v30   ;;  %v2074_v0 = vpop.eup %2073  ;;  %v1464_v30 = vld [vmem:[#allocation4 + $0x58] sm:$0xff] }
 0x397   : > { %v2076_v18 = vpop.eup %2075 }
 0x399   : > { %1516 = vperm.xlu1 %2044, %v2062_v41  }
 0x39a   : > { %1511 = vperm.xlu0 %2043, %v2064_v31  }
 0x39d   : > { %1526 = vperm.xlu1 %2044, %v2066_v35  }
 0x39e   : > { %1521 = vperm.xlu0 %2043, %v2068_v40  }
 0x3a1   : > { %1536 = vperm.xlu1 %2044, %v2070_v11  }
 0x3a2   : > { %1531 = vperm.xlu0 %2043, %v2072_v3  }
 0x3a5   : > { %1546 = vperm.xlu1 %2044, %v2074_v0  }
 0x3a6   : > { %1541 = vperm.xlu0 %2043, %v2076_v18  }
 0x408   : > { %v1482_v48 = vpop.permute.xlu1 %1481 }
 0x409   : > { %v1551_v1 = vmul.f32 %v1482_v48, %v1455_v13  ;;  %v1472_v23 = vpop.permute.xlu0 %1471 }
 0x40a   : > { %v1549_v14 = vmul.f32 %v1472_v23, %v1453_v60  ;;  %v1466_v60 = vld [vmem:[#allocation4 + $0x68] sm:$0xff]  ;;  %v1465_v23 = vld [vmem:[#allocation4 + $0x60] sm:$0xff] }
 0x40b   : > { %v1574_v62 = vadd.f32 %v2845_v43, %v1551_v1 }
 0x40c   : > { %v1572_v34 = vadd.f32 %v2845_v43, %v1549_v14  ;;  %v1487_v2 = vpop.permute.xlu1 %1486 }
 0x40d   : > { %v1590_v15 = vmax.f32 %v1574_v62, 0.0  ;;  %v1552_v9 = vmul.f32 %v1487_v2, %v1456_v17  ;;  %v1477_v20 = vpop.permute.xlu0 %1476 }
 0x40e   : > { %v1588_v59 = vmax.f32 %v1572_v34, 0.0  ;;  %v1550_v27 = vmul.f32 %v1477_v20, %v1454_v29  ;;  %v1468_v20 = vld [vmem:[#allocation4 + $0x78] sm:$0xff] }
 0x40f   : > { %v1845_v6 = vpack.c.bf16 %v1590_v15, %v1590_v15  ;;  %v1575_v33 = vadd.f32 %v2845_v43, %v1552_v9 }
 0x410   : > { %v1843_v56 = vpack.c.bf16 %v1588_v59, %v1588_v59  ;;  %v1573_v16 = vadd.f32 %v2845_v43, %v1550_v27  ;;  %v1497_v22 = vpop.permute.xlu1 %1496 }
 0x411   : > { %1671 = vst.msk [vmem:[%s2272_s23 + $0x8] sm:$0xf] %vm1668_vm8, %v1845_v6  ;;  %v1591_v7 = vmax.f32 %v1575_v33, 0.0  ;;  %v1554_v21 = vmul.f32 %v1497_v22, %v1458_v26  ;;  %v1492_v28 = vpop.permute.xlu0 %1491  ;;  %v1467_v26 = vld [vmem:[#allocation4 + $0x70] sm:$0xff] }
 0x412   : > { %1669 = vst.msk [vmem:[%s2272_s23] sm:$0xf] %vm1668_vm8, %v1843_v56  ;;  %v1589_v50 = vmax.f32 %v1573_v16, 0.0  ;;  %v1553_v32 = vmul.f32 %v1492_v28, %v1457_v51 }
 0x413   : > { %v1846_v39 = vpack.c.bf16 %v1591_v7, %v1591_v7  ;;  %v1577_v36 = vadd.f32 %v2845_v43, %v1554_v21 }
 0x414   : > { %v1844_v44 = vpack.c.bf16 %v1589_v50, %v1589_v50  ;;  %v1576_v37 = vadd.f32 %v2845_v43, %v1553_v32  ;;  %v1507_v45 = vpop.permute.xlu1 %1506 }
 0x415   : > { %1672 = vst.msk [vmem:[%s2272_s23 + $0xc] sm:$0xf] %vm1668_vm8, %v1846_v39  ;;  %v1593_v38 = vmax.f32 %v1577_v36, 0.0  ;;  %v1556_v46 = vmul.f32 %v1507_v45, %v1460_v5  ;;  %v1502_v4 = vpop.permute.xlu0 %1501 }
 0x416   : > { %1670 = vst.msk [vmem:[%s2272_s23 + $0x4] sm:$0xf] %vm1668_vm8, %v1844_v44  ;;  %v1592_v19 = vmax.f32 %v1576_v37, 0.0  ;;  %v1555_v47 = vmul.f32 %v1502_v4, %v1459_v42 }
 0x417   : > { %v1848_v53 = vpack.c.bf16 %v1593_v38, %v1593_v38  ;;  %v1579_v54 = vadd.f32 %v2845_v43, %v1556_v46 }
 0x418   : > { %v1847_v25 = vpack.c.bf16 %v1592_v19, %v1592_v19  ;;  %v1578_v12 = vadd.f32 %v2845_v43, %v1555_v47  ;;  %v1517_v55 = vpop.permute.xlu1 %1516 }
 0x419   : > { %1674 = vst.msk [vmem:[%s2272_s23 + $0x14] sm:$0xf] %vm1668_vm8, %v1848_v53  ;;  %v1595_v57 = vmax.f32 %v1579_v54, 0.0  ;;  %v1558_v49 = vmul.f32 %v1517_v55, %v1462_v52  ;;  %v1512_v58 = vpop.permute.xlu0 %1511 }
 0x41a   : > { %1673 = vst.msk [vmem:[%s2272_s23 + $0x10] sm:$0xf] %vm1668_vm8, %v1847_v25  ;;  %v1594_v61 = vmax.f32 %v1578_v12, 0.0  ;;  %v1557_v24 = vmul.f32 %v1512_v58, %v1461_v8 }
 0x41b   : > { %v1850_v10 = vpack.c.bf16 %v1595_v57, %v1595_v57  ;;  %v1581_v41 = vadd.f32 %v2845_v43, %v1558_v49 }
 0x41c   : > { %v1849_v31 = vpack.c.bf16 %v1594_v61, %v1594_v61  ;;  %v1580_v35 = vadd.f32 %v2845_v43, %v1557_v24  ;;  %v1527_v40 = vpop.permute.xlu1 %1526 }
 0x41d   : > { %1676 = vst.msk [vmem:[%s2272_s23 + $0x1c] sm:$0xf] %vm1668_vm8, %v1850_v10  ;;  %v1597_v11 = vmax.f32 %v1581_v41, 0.0  ;;  %v1560_v3 = vmul.f32 %v1527_v40, %v1464_v30  ;;  %v1522_v0 = vpop.permute.xlu0 %1521 }
 0x41e   : > { %1675 = vst.msk [vmem:[%s2272_s23 + $0x18] sm:$0xf] %vm1668_vm8, %v1849_v31  ;;  %v1596_v18 = vmax.f32 %v1580_v35, 0.0  ;;  %v1559_v13 = vmul.f32 %v1522_v0, %v1463_v63 }
 0x41f   : > { %v1852_v48 = vpack.c.bf16 %v1597_v11, %v1597_v11  ;;  %v1583_v1 = vadd.f32 %v2845_v43, %v1560_v3 }
 0x420   : > { %v1851_v14 = vpack.c.bf16 %v1596_v18, %v1596_v18  ;;  %v1582_v17 = vadd.f32 %v2845_v43, %v1559_v13  ;;  %v1537_v62 = vpop.permute.xlu1 %1536 }
 0x421   : > { %1678 = vst.msk [vmem:[%s2272_s23 + $0x24] sm:$0xf] %vm1668_vm8, %v1852_v48  ;;  %v1599_v29 = vmax.f32 %v1583_v1, 0.0  ;;  %v1562_v34 = vmul.f32 %v1537_v62, %v1466_v60  ;;  %v1532_v2 = vpop.permute.xlu0 %1531 }
 0x422   : > { %1677 = vst.msk [vmem:[%s2272_s23 + $0x20] sm:$0xf] %vm1668_vm8, %v1851_v14  ;;  %v1598_v15 = vmax.f32 %v1582_v17, 0.0  ;;  %v1561_v9 = vmul.f32 %v1532_v2, %v1465_v23 }
 0x423   : > { %v1854_v59 = vpack.c.bf16 %v1599_v29, %v1599_v29  ;;  %v1585_v27 = vadd.f32 %v2845_v43, %v1562_v34 }
 0x424   : > { %v1853_v6 = vpack.c.bf16 %v1598_v15, %v1598_v15  ;;  %v1584_v33 = vadd.f32 %v2845_v43, %v1561_v9  ;;  %v1547_v51 = vpop.permute.xlu1 %1546 }
 0x425   : > { %1680 = vst.msk [vmem:[%s2272_s23 + $0x2c] sm:$0xf] %vm1668_vm8, %v1854_v59  ;;  %v1601_v56 = vmax.f32 %v1585_v27, 0.0  ;;  %v1564_v16 = vmul.f32 %v1547_v51, %v1468_v20  ;;  %v1542_v22 = vpop.permute.xlu0 %1541 }
 0x426   : > { %1679 = vst.msk [vmem:[%s2272_s23 + $0x28] sm:$0xf] %vm1668_vm8, %v1853_v6  ;;  %v1600_v7 = vmax.f32 %v1584_v33, 0.0  ;;  %v1563_v21 = vmul.f32 %v1542_v22, %v1467_v26 }
 0x427   : > { %v1856_v28 = vpack.c.bf16 %v1601_v56, %v1601_v56  ;;  %v1587_v50 = vadd.f32 %v2845_v43, %v1564_v16 }
 0x428   : > { %v1855_v32 = vpack.c.bf16 %v1600_v7, %v1600_v7  ;;  %v1586_v5 = vadd.f32 %v2845_v43, %v1563_v21 }
 0x429   : > { %1682 = vst.msk [vmem:[%s2272_s23 + $0x34] sm:$0xf] %vm1668_vm8, %v1856_v28  ;;  %v1603_v39 = vmax.f32 %v1587_v50, 0.0 }
 0x42a   : > { %1681 = vst.msk [vmem:[%s2272_s23 + $0x30] sm:$0xf] %vm1668_vm8, %v1855_v32  ;;  %v1602_v36 = vmax.f32 %v1586_v5, 0.0 }
 0x42b   : > { %v1858_v42 = vpack.c.bf16 %v1603_v39, %v1603_v39 }
 0x42c   : > { %v1857_v44 = vpack.c.bf16 %v1602_v36, %v1602_v36 }
 0x42d   : > { %1684 = vst.msk [vmem:[%s2272_s23 + $0x3c] sm:$0xf] %vm1668_vm8, %v1858_v42 }
 0x42e   : > { %1683 = vst.msk [vmem:[%s2272_s23 + $0x38] sm:$0xf] %vm1668_vm8, %v1857_v44 }
 0x42f PF: > { %s22_s7 = sadd.s32 1, %s2145_s7   ;;  %s2969_s13 = sld [smem:[#allocation9_spill]] }
 0x430   : > { %p19_p7 = scmp.ge.s32.totalorder %s22_s7, 6   ;;  %s2970_s15 = sld [smem:[#allocation10_spill]] }
 0x431   : > { %s2971_s26 = smov %s2125_s27  ;;  %s2972_s27 = smov %s2242_s14 }
 0x432   : > { %s2973_s28 = smov %s2137_s29  ;;  %s2974_s0 = smov %s2141_s30 }
 0x433   :  { %21 = sbr.rel (!%p19_p7) target bundleno = 19 (0x13), region = 134 }
 0x435   : > { %s2975_s29 = smov %s2969_s13 }
 0x436   : > { %s2976_s30 = smov %s2970_s15 }

</bundles_post_ra>
